<compile_context>
chip_gen: v7x
topology: tpu7x:2x2x1
jax: 0.10.0
libtpu: 0.0.40
codegen_flags: <defaults>
</compile_context>

<pallas_src>
import jax
import jax.numpy as jnp
from jax import lax
from jax.experimental import pallas as pl
from jax.experimental.pallas import tpu as pltpu
import numpy as np

# ----- model dims (small, forward-consistent) -----
VOCAB = 64
EMBED = 32
HIDDEN = 32          # GRU hidden per direction; bi-GRU output is 2*HIDDEN
OUTPUT = 8
BATCH = 2
SEQ = 8

# ----- packed-parameter row layout (width = 6*HIDDEN = 192 lanes) -----
# merged gate column layout everywhere: [r_f | r_b | z_f | z_b | n_f | n_b], each H wide
R_TAB = 0                      # rows [0,128): token -> gate pre-activation table
                               #   rows [0,64)  : fwd  (emb@w_ih_f + b_ih_f + b_hh_f[r,z]) in fwd cols
                               #   rows [64,128): bwd  (emb@w_ih_b + b_ih_b + b_hh_b[r,z]) in bwd cols
R_WHH = 2 * VOCAB              # rows [128,192): block-packed w_hh (2H, 6H)
R_MISC = R_WHH + 2 * HIDDEN    # rows [192,200): b_hh_n | w_attn | b_fc
R_WFC = R_MISC + 8             # rows [200,264): w_fc (2H, O) in cols [0,O)
R_TOTAL = R_WFC + 2 * HIDDEN   # 264
PCOLS = 6 * HIDDEN             # 192


def intent_kernel(tok_ref,     # (T*B, 2) int32, VMEM: [token(t), token(T-1-t)+VOCAB]
                  p_ref,       # (R_TOTAL, 6H) f32, VMEM (single packed param block)
                  out_ref):    # (B, O) f32
    T, B, H, O, V = SEQ, BATCH, HIDDEN, OUTPUT, VOCAB
    H2, H4, H6 = 2 * H, 4 * H, 6 * H

    # ---- fused embedding + input projection: ONE one-hot MXU matmul ----
    tok = tok_ref[...]                                               # (T*B, 2) int32
    iota = lax.broadcasted_iota(jnp.int32, (T * B, 2 * V), 1)
    onehot = jnp.logical_or(iota == tok[:, 0:1],
                            iota == tok[:, 1:2]).astype(jnp.float32)  # (T*B, 2V)
    tab = p_ref[R_TAB:R_TAB + 2 * V, :]                              # (2V, 6H)
    # gi row i*B+b already holds the merged per-step layout
    #   [r_f(t=i) | r_b(s=T-1-i) | z_f | z_b | n_f | n_b]  (+ folded biases)
    gi = jnp.dot(onehot, tab, preferred_element_type=jnp.float32)    # (T*B, 6H)

    # ---- hoisted parameter slices ----
    w_hh = p_ref[R_WHH:R_WHH + H2, :]                                # (2H, 6H) block-packed
    b_hh_n = p_ref[R_MISC + 0:R_MISC + 1, 0:H2]                      # (1, 2H) n-gate hidden bias
    wa_f = p_ref[R_MISC + 1:R_MISC + 2, 0:H]                         # (1, H)
    wa_b = p_ref[R_MISC + 1:R_MISC + 2, H:H2]                        # (1, H)
    b_fc = p_ref[R_MISC + 2:R_MISC + 3, 0:O]                         # (1, O)
    w_fc_f = p_ref[R_WFC:R_WFC + H, 0:O]                             # (H, O)
    w_fc_b = p_ref[R_WFC + H:R_WFC + H2, 0:O]                        # (H, O)

    # ---- merged bidirectional GRU, fully unrolled (T=8), state in vregs ----
    # h = [h_f(time i) | h_b(time T-1-i)]; one matmul + 3 transcendentals / step.
    h = jnp.zeros((B, H2), jnp.float32)
    h_steps = []
    for i in range(T):                          # static loop == full unroll
        gh = jnp.dot(h, w_hh, preferred_element_type=jnp.float32)    # (B, 6H)
        g = gi[i * B:(i + 1) * B, :]                                  # (B, 6H)
        # PyTorch GRU gate order r, z, n; r/z hidden biases folded into the table.
        r = jax.nn.sigmoid(g[:, 0:H2] + gh[:, 0:H2])
        z = jax.nn.sigmoid(g[:, H2:H4] + gh[:, H2:H4])
        n = jnp.tanh(g[:, H4:H6] + r * (gh[:, H4:H6] + b_hh_n))
        h = (1.0 - z) * n + z * h
        h_steps.append(h)

    # hidden states per *time position* (bwd half is time-reversed by indexing)
    hf = [h_steps[t][:, 0:H] for t in range(T)]          # fwd hidden at time t
    hb = [h_steps[T - 1 - t][:, H:H2] for t in range(T)]  # bwd hidden at time t

    # ---- attention over time (b_attn is a no-op under softmax -> dropped) ----
    s = [jnp.sum(hf[t] * wa_f, axis=-1, keepdims=True)
         + jnp.sum(hb[t] * wa_b, axis=-1, keepdims=True) for t in range(T)]   # (B,1) each
    m = s[0]
    for t in range(1, T):
        m = jnp.maximum(m, s[t])
    e = [jnp.exp(s[t] - m) for t in range(T)]
    denom = e[0]
    for t in range(1, T):
        denom = denom + e[t]                                          # (B, 1)
    acc_f = e[0] * hf[0]
    acc_b = e[0] * hb[0]
    for t in range(1, T):
        acc_f = acc_f + e[t] * hf[t]                                  # (B, H) unnormalized ctx
        acc_b = acc_b + e[t] * hb[t]

    # ---- dropout = identity at inference; final Linear (split, no concat).
    # Softmax normalization applied AFTER the linear (exact, by linearity).
    logits = (jnp.dot(acc_f, w_fc_f, preferred_element_type=jnp.float32)
              + jnp.dot(acc_b, w_fc_b, preferred_element_type=jnp.float32))   # (B, O)
    out_ref[...] = logits / denom + b_fc


def intent_classifier_forward(tokens, packed_params):
    """tokens: (B, T) int32; packed_params: (R_TOTAL, 6H) f32 from pack_params."""
    T, B, V = SEQ, BATCH, VOCAB
    tok_tm = jnp.transpose(tokens.astype(jnp.int32))          # (T, B) time-major
    tok_fwd = tok_tm.reshape(T * B, 1)                        # token at time i
    tok_bwd = tok_tm[::-1].reshape(T * B, 1) + V              # token at time T-1-i -> bwd table rows
    tok2 = jnp.concatenate([tok_fwd, tok_bwd], axis=1)        # (T*B, 2)
    return pl.pallas_call(
        intent_kernel,
        out_shape=jax.ShapeDtypeStruct((B, OUTPUT), jnp.float32),
        in_specs=[
            pl.BlockSpec(memory_space=pltpu.MemorySpace.VMEM),   # tokens (for one-hot compare)
            pl.BlockSpec(memory_space=pltpu.MemorySpace.VMEM),   # packed params (1 DMA)
        ],
        out_specs=pl.BlockSpec(memory_space=pltpu.MemorySpace.VMEM),
    )(tok2, packed_params)


# ----- one-time host-side packing: 13 small tensors -> one (264,192) array -----
def pack_params(p):
    H, O, V = HIDDEN, OUTPUT, VOCAB
    emb = np.asarray(p["embedding"], np.float32)                         # (V, E)
    P = np.zeros((R_TOTAL, PCOLS), np.float32)

    # token -> gate pre-activation table, biases folded (b_ih fully; b_hh for r,z only)
    gi_f = emb @ np.asarray(p["w_ih_f"], np.float32) + np.asarray(p["b_ih_f"], np.float32)[0]
    gi_b = emb @ np.asarray(p["w_ih_b"], np.float32) + np.asarray(p["b_ih_b"], np.float32)[0]
    gi_f[:, 0:2 * H] += np.asarray(p["b_hh_f"], np.float32)[0, 0:2 * H]
    gi_b[:, 0:2 * H] += np.asarray(p["b_hh_b"], np.float32)[0, 0:2 * H]
    for g in range(3):  # gates r, z, n -> merged columns [g_f | g_b]
        P[R_TAB:R_TAB + V, 2 * g * H:(2 * g + 1) * H] = gi_f[:, g * H:(g + 1) * H]
        P[R_TAB + V:R_TAB + 2 * V, (2 * g + 1) * H:(2 * g + 2) * H] = gi_b[:, g * H:(g + 1) * H]

    # block-packed recurrence weights: rows [0,H)=fwd, [H,2H)=bwd
    whf = np.asarray(p["w_hh_f"], np.float32)
    whb = np.asarray(p["w_hh_b"], np.float32)
    for g in range(3):
        P[R_WHH:R_WHH + H, 2 * g * H:(2 * g + 1) * H] = whf[:, g * H:(g + 1) * H]
        P[R_WHH + H:R_WHH + 2 * H, (2 * g + 1) * H:(2 * g + 2) * H] = whb[:, g * H:(g + 1) * H]

    # misc rows: n-gate hidden bias | attention weight | fc bias (b_attn dropped: softmax no-op)
    P[R_MISC + 0, 0:H] = np.asarray(p["b_hh_f"], np.float32)[0, 2 * H:3 * H]
    P[R_MISC + 0, H:2 * H] = np.asarray(p["b_hh_b"], np.float32)[0, 2 * H:3 * H]
    P[R_MISC + 1, 0:2 * H] = np.asarray(p["w_attn"], np.float32)[0]
    P[R_MISC + 2, 0:O] = np.asarray(p["b_fc"], np.float32)[0]

    # fc weight (2H, O)
    P[R_WFC:R_WFC + 2 * H, 0:O] = np.asarray(p["w_fc"], np.float32)
    return jnp.asarray(P)


# ----- pure-JAX reference (same math, for a correctness check) -----
def _gru_dir_ref(x, wi, wh, bi, bh):
    H = HIDDEN

    def step(h, xt):
        gi = xt @ wi + bi
        gh = h @ wh + bh
        r = jax.nn.sigmoid(gi[:, :H] + gh[:, :H])
        z = jax.nn.sigmoid(gi[:, H:2 * H] + gh[:, H:2 * H])
        n = jnp.tanh(gi[:, 2 * H:] + r * gh[:, 2 * H:])
        h_new = (1.0 - z) * n + z * h
        return h_new, h_new

    h0 = jnp.zeros((x.shape[1], H), jnp.float32)
    _, hs = lax.scan(step, h0, x)
    return hs


def reference_forward(tokens, p):
    x = p["embedding"][tokens].astype(jnp.float32)         # (B, T, E)
    x = jnp.transpose(x, (1, 0, 2))                        # (T, B, E)
    hf = _gru_dir_ref(x, p["w_ih_f"], p["w_hh_f"], p["b_ih_f"], p["b_hh_f"])
    hb = _gru_dir_ref(x[::-1], p["w_ih_b"], p["w_hh_b"], p["b_ih_b"], p["b_hh_b"])[::-1]
    gru = jnp.concatenate([hf, hb], axis=-1)               # (T, B, 2H)
    scores = jnp.sum(gru * p["w_attn"][None], axis=-1, keepdims=True) + p["b_attn"][0, 0]
    w = jax.nn.softmax(scores, axis=0)
    ctx = jnp.sum(w * gru, axis=0)                         # (B, 2H)
    return ctx @ p["w_fc"] + p["b_fc"]


def init_params(key):
    ks = jax.random.split(key, 12)
    H, E, O = HIDDEN, EMBED, OUTPUT
    s = 0.1
    return {
        # embedding stands in for SentencePiece/fastText pretrained matrix (synthetic)
        "embedding": jax.random.normal(ks[0], (VOCAB, E), jnp.float32) * s,
        # GRU weights stored pre-transposed: x @ (E,3H), h @ (H,3H); gate order r,z,n
        "w_ih_f": jax.random.normal(ks[1], (E, 3 * H), jnp.float32) * s,
        "w_hh_f": jax.random.normal(ks[2], (H, 3 * H), jnp.float32) * s,
        "b_ih_f": jax.random.normal(ks[3], (1, 3 * H), jnp.float32) * s,
        "b_hh_f": jax.random.normal(ks[4], (1, 3 * H), jnp.float32) * s,
        "w_ih_b": jax.random.normal(ks[5], (E, 3 * H), jnp.float32) * s,
        "w_hh_b": jax.random.normal(ks[6], (H, 3 * H), jnp.float32) * s,
        "b_ih_b": jax.random.normal(ks[7], (1, 3 * H), jnp.float32) * s,
        "b_hh_b": jax.random.normal(ks[8], (1, 3 * H), jnp.float32) * s,
        # attention Linear(2H -> 1): weight shape (1, 2H) as in nn.Linear
        "w_attn": jax.random.normal(ks[9], (1, 2 * H), jnp.float32) * s,
        "b_attn": jnp.zeros((1, 1), jnp.float32),
        # fc Linear(2H -> O): stored pre-transposed (2H, O)
        "w_fc": jax.random.normal(ks[10], (2 * H, O), jnp.float32) * s,
        "b_fc": jax.random.normal(ks[11], (1, O), jnp.float32) * s,
    }


if __name__ == "__main__":
    key = jax.random.PRNGKey(0)
    pkey, tkey = jax.random.split(key)
    params = init_params(pkey)
    tokens = jax.random.randint(tkey, (BATCH, SEQ), 0, VOCAB, dtype=jnp.int32)

    packed = pack_params(params)   # one-time packing at init (not per forward call)

    out = jax.block_until_ready(intent_classifier_forward(tokens, packed))
    ref = jax.block_until_ready(reference_forward(tokens, params))

    assert out.shape == (BATCH, OUTPUT)
    # slightly relaxed atol: accumulation order differs (host-precomputed input
    # projection, merged fwd/bwd gates, post-linear softmax normalization) but
    # the math is identical.
    np.testing.assert_allclose(np.asarray(out), np.asarray(ref), rtol=1e-4, atol=5e-4)
    print("KERNEL_OK")
</pallas_src>

<mosaic_0001>
module attributes {stable_mosaic.version = 11 : i64} {
  func.func @intent_kernel(%arg0: memref<16x2xi32, #tpu.memory_space<vmem>>, %arg1: memref<264x192xf32, #tpu.memory_space<vmem>>, %arg2: memref<2x8xf32, #tpu.memory_space<vmem>>) attributes {dimension_semantics = [], scalar_prefetch = 0 : i64, scratch_operands = 0 : i64, tpu.core_type = #tpu.core_type<tc>} {
    %c0 = arith.constant 0 : index
    %c0_0 = arith.constant 0 : index
    %0 = vector.load %arg0[%c0, %c0_0] : memref<16x2xi32, #tpu.memory_space<vmem>>, vector<16x2xi32>
    %1 = tpu.iota {dimensions = array<i32: 1>} : vector<16x128xi32>
    %2 = vector.extract_strided_slice %0 {offsets = [0, 0], sizes = [16, 1], strides = [1, 1]} : vector<16x2xi32> to vector<16x1xi32>
    %3 = vector.broadcast %2 : vector<16x1xi32> to vector<16x128xi32>
    %4 = arith.cmpi eq, %1, %3 : vector<16x128xi32>
    %5 = vector.extract_strided_slice %0 {offsets = [0, 1], sizes = [16, 1], strides = [1, 1]} : vector<16x2xi32> to vector<16x1xi32>
    %6 = vector.broadcast %5 : vector<16x1xi32> to vector<16x128xi32>
    %7 = arith.cmpi eq, %1, %6 : vector<16x128xi32>
    %8 = arith.ori %4, %7 : vector<16x128xi1>
    %9 = arith.extui %8 : vector<16x128xi1> to vector<16x128xi32>
    %10 = arith.sitofp %9 : vector<16x128xi32> to vector<16x128xf32>
    %c0_1 = arith.constant 0 : index
    %c0_2 = arith.constant 0 : index
    %11 = vector.load %arg1[%c0_1, %c0_2] : memref<264x192xf32, #tpu.memory_space<vmem>>, vector<128x192xf32>
    %cst = arith.constant dense<0.000000e+00> : vector<16x192xf32>
    %12 = tpu.matmul %10, %11, %cst {dimension_numbers = #tpu.dot_dimension_numbers<[1], [0], [0], [1], [0, 0, 1, 1], [], []>} : vector<16x128xf32>, vector<128x192xf32>, vector<16x192xf32> -> vector<16x192xf32>
    %c128 = arith.constant 128 : index
    %c0_3 = arith.constant 0 : index
    %13 = vector.load %arg1[%c128, %c0_3] : memref<264x192xf32, #tpu.memory_space<vmem>>, vector<64x192xf32>
    %c192 = arith.constant 192 : index
    %c0_4 = arith.constant 0 : index
    %14 = vector.load %arg1[%c192, %c0_4] : memref<264x192xf32, #tpu.memory_space<vmem>>, vector<1x64xf32>
    %c193 = arith.constant 193 : index
    %c0_5 = arith.constant 0 : index
    %15 = vector.load %arg1[%c193, %c0_5] : memref<264x192xf32, #tpu.memory_space<vmem>>, vector<1x32xf32>
    %c193_6 = arith.constant 193 : index
    %c32 = arith.constant 32 : index
    %16 = vector.load %arg1[%c193_6, %c32] : memref<264x192xf32, #tpu.memory_space<vmem>>, vector<1x32xf32>
    %c194 = arith.constant 194 : index
    %c0_7 = arith.constant 0 : index
    %17 = vector.load %arg1[%c194, %c0_7] : memref<264x192xf32, #tpu.memory_space<vmem>>, vector<1x8xf32>
    %c200 = arith.constant 200 : index
    %c0_8 = arith.constant 0 : index
    %18 = vector.load %arg1[%c200, %c0_8] : memref<264x192xf32, #tpu.memory_space<vmem>>, vector<32x8xf32>
    %c232 = arith.constant 232 : index
    %c0_9 = arith.constant 0 : index
    %19 = vector.load %arg1[%c232, %c0_9] : memref<264x192xf32, #tpu.memory_space<vmem>>, vector<32x8xf32>
    %cst_10 = arith.constant 0.000000e+00 : f32
    %20 = vector.broadcast %cst_10 : f32 to vector<2x64xf32>
    %cst_11 = arith.constant dense<0.000000e+00> : vector<2x192xf32>
    %21 = tpu.matmul %20, %13, %cst_11 {dimension_numbers = #tpu.dot_dimension_numbers<[1], [0], [0], [1], [0, 0, 1, 1], [], []>} : vector<2x64xf32>, vector<64x192xf32>, vector<2x192xf32> -> vector<2x192xf32>
    %22 = vector.extract_strided_slice %12 {offsets = [0, 0], sizes = [2, 192], strides = [1, 1]} : vector<16x192xf32> to vector<2x192xf32>
    %23 = vector.extract_strided_slice %22 {offsets = [0, 0], sizes = [2, 64], strides = [1, 1]} : vector<2x192xf32> to vector<2x64xf32>
    %24 = vector.extract_strided_slice %21 {offsets = [0, 0], sizes = [2, 64], strides = [1, 1]} : vector<2x192xf32> to vector<2x64xf32>
    %25 = arith.addf %23, %24 : vector<2x64xf32>
    %26 = arith.negf %25 : vector<2x64xf32>
    %27 = math.exp %26 : vector<2x64xf32>
    %cst_12 = arith.constant 1.000000e+00 : f32
    %28 = vector.broadcast %cst_12 : f32 to vector<2x64xf32>
    %29 = arith.addf %28, %27 : vector<2x64xf32>
    %30 = arith.divf %28, %29 : vector<2x64xf32>
    %31 = vector.extract_strided_slice %22 {offsets = [0, 64], sizes = [2, 64], strides = [1, 1]} : vector<2x192xf32> to vector<2x64xf32>
    %32 = vector.extract_strided_slice %21 {offsets = [0, 64], sizes = [2, 64], strides = [1, 1]} : vector<2x192xf32> to vector<2x64xf32>
    %33 = arith.addf %31, %32 : vector<2x64xf32>
    %34 = arith.negf %33 : vector<2x64xf32>
    %35 = math.exp %34 : vector<2x64xf32>
    %cst_13 = arith.constant 1.000000e+00 : f32
    %36 = vector.broadcast %cst_13 : f32 to vector<2x64xf32>
    %37 = arith.addf %36, %35 : vector<2x64xf32>
    %38 = arith.divf %36, %37 : vector<2x64xf32>
    %39 = vector.extract_strided_slice %22 {offsets = [0, 128], sizes = [2, 64], strides = [1, 1]} : vector<2x192xf32> to vector<2x64xf32>
    %40 = vector.extract_strided_slice %21 {offsets = [0, 128], sizes = [2, 64], strides = [1, 1]} : vector<2x192xf32> to vector<2x64xf32>
    %41 = vector.broadcast %14 : vector<1x64xf32> to vector<2x64xf32>
    %42 = arith.addf %40, %41 : vector<2x64xf32>
    %43 = arith.mulf %30, %42 : vector<2x64xf32>
    %44 = arith.addf %39, %43 : vector<2x64xf32>
    %45 = math.tanh %44 : vector<2x64xf32>
    %cst_14 = arith.constant 1.000000e+00 : f32
    %46 = vector.broadcast %cst_14 : f32 to vector<2x64xf32>
    %47 = arith.subf %46, %38 : vector<2x64xf32>
    %48 = arith.mulf %47, %45 : vector<2x64xf32>
    %49 = arith.mulf %38, %20 : vector<2x64xf32>
    %50 = arith.addf %48, %49 : vector<2x64xf32>
    %cst_15 = arith.constant dense<0.000000e+00> : vector<2x192xf32>
    %51 = tpu.matmul %50, %13, %cst_15 {dimension_numbers = #tpu.dot_dimension_numbers<[1], [0], [0], [1], [0, 0, 1, 1], [], []>} : vector<2x64xf32>, vector<64x192xf32>, vector<2x192xf32> -> vector<2x192xf32>
    %52 = vector.extract_strided_slice %12 {offsets = [2, 0], sizes = [2, 192], strides = [1, 1]} : vector<16x192xf32> to vector<2x192xf32>
    %53 = vector.extract_strided_slice %52 {offsets = [0, 0], sizes = [2, 64], strides = [1, 1]} : vector<2x192xf32> to vector<2x64xf32>
    %54 = vector.extract_strided_slice %51 {offsets = [0, 0], sizes = [2, 64], strides = [1, 1]} : vector<2x192xf32> to vector<2x64xf32>
    %55 = arith.addf %53, %54 : vector<2x64xf32>
    %56 = arith.negf %55 : vector<2x64xf32>
    %57 = math.exp %56 : vector<2x64xf32>
    %cst_16 = arith.constant 1.000000e+00 : f32
    %58 = vector.broadcast %cst_16 : f32 to vector<2x64xf32>
    %59 = arith.addf %58, %57 : vector<2x64xf32>
    %60 = arith.divf %58, %59 : vector<2x64xf32>
    %61 = vector.extract_strided_slice %52 {offsets = [0, 64], sizes = [2, 64], strides = [1, 1]} : vector<2x192xf32> to vector<2x64xf32>
    %62 = vector.extract_strided_slice %51 {offsets = [0, 64], sizes = [2, 64], strides = [1, 1]} : vector<2x192xf32> to vector<2x64xf32>
    %63 = arith.addf %61, %62 : vector<2x64xf32>
    %64 = arith.negf %63 : vector<2x64xf32>
    %65 = math.exp %64 : vector<2x64xf32>
    %cst_17 = arith.constant 1.000000e+00 : f32
    %66 = vector.broadcast %cst_17 : f32 to vector<2x64xf32>
    %67 = arith.addf %66, %65 : vector<2x64xf32>
    %68 = arith.divf %66, %67 : vector<2x64xf32>
    %69 = vector.extract_strided_slice %52 {offsets = [0, 128], sizes = [2, 64], strides = [1, 1]} : vector<2x192xf32> to vector<2x64xf32>
    %70 = vector.extract_strided_slice %51 {offsets = [0, 128], sizes = [2, 64], strides = [1, 1]} : vector<2x192xf32> to vector<2x64xf32>
    %71 = vector.broadcast %14 : vector<1x64xf32> to vector<2x64xf32>
    %72 = arith.addf %70, %71 : vector<2x64xf32>
    %73 = arith.mulf %60, %72 : vector<2x64xf32>
    %74 = arith.addf %69, %73 : vector<2x64xf32>
    %75 = math.tanh %74 : vector<2x64xf32>
    %cst_18 = arith.constant 1.000000e+00 : f32
    %76 = vector.broadcast %cst_18 : f32 to vector<2x64xf32>
    %77 = arith.subf %76, %68 : vector<2x64xf32>
    %78 = arith.mulf %77, %75 : vector<2x64xf32>
    %79 = arith.mulf %68, %50 : vector<2x64xf32>
    %80 = arith.addf %78, %79 : vector<2x64xf32>
    %cst_19 = arith.constant dense<0.000000e+00> : vector<2x192xf32>
    %81 = tpu.matmul %80, %13, %cst_19 {dimension_numbers = #tpu.dot_dimension_numbers<[1], [0], [0], [1], [0, 0, 1, 1], [], []>} : vector<2x64xf32>, vector<64x192xf32>, vector<2x192xf32> -> vector<2x192xf32>
    %82 = vector.extract_strided_slice %12 {offsets = [4, 0], sizes = [2, 192], strides = [1, 1]} : vector<16x192xf32> to vector<2x192xf32>
    %83 = vector.extract_strided_slice %82 {offsets = [0, 0], sizes = [2, 64], strides = [1, 1]} : vector<2x192xf32> to vector<2x64xf32>
    %84 = vector.extract_strided_slice %81 {offsets = [0, 0], sizes = [2, 64], strides = [1, 1]} : vector<2x192xf32> to vector<2x64xf32>
    %85 = arith.addf %83, %84 : vector<2x64xf32>
    %86 = arith.negf %85 : vector<2x64xf32>
    %87 = math.exp %86 : vector<2x64xf32>
    %cst_20 = arith.constant 1.000000e+00 : f32
    %88 = vector.broadcast %cst_20 : f32 to vector<2x64xf32>
    %89 = arith.addf %88, %87 : vector<2x64xf32>
    %90 = arith.divf %88, %89 : vector<2x64xf32>
    %91 = vector.extract_strided_slice %82 {offsets = [0, 64], sizes = [2, 64], strides = [1, 1]} : vector<2x192xf32> to vector<2x64xf32>
    %92 = vector.extract_strided_slice %81 {offsets = [0, 64], sizes = [2, 64], strides = [1, 1]} : vector<2x192xf32> to vector<2x64xf32>
    %93 = arith.addf %91, %92 : vector<2x64xf32>
    %94 = arith.negf %93 : vector<2x64xf32>
    %95 = math.exp %94 : vector<2x64xf32>
    %cst_21 = arith.constant 1.000000e+00 : f32
    %96 = vector.broadcast %cst_21 : f32 to vector<2x64xf32>
    %97 = arith.addf %96, %95 : vector<2x64xf32>
    %98 = arith.divf %96, %97 : vector<2x64xf32>
    %99 = vector.extract_strided_slice %82 {offsets = [0, 128], sizes = [2, 64], strides = [1, 1]} : vector<2x192xf32> to vector<2x64xf32>
    %100 = vector.extract_strided_slice %81 {offsets = [0, 128], sizes = [2, 64], strides = [1, 1]} : vector<2x192xf32> to vector<2x64xf32>
    %101 = vector.broadcast %14 : vector<1x64xf32> to vector<2x64xf32>
    %102 = arith.addf %100, %101 : vector<2x64xf32>
    %103 = arith.mulf %90, %102 : vector<2x64xf32>
    %104 = arith.addf %99, %103 : vector<2x64xf32>
    %105 = math.tanh %104 : vector<2x64xf32>
    %cst_22 = arith.constant 1.000000e+00 : f32
    %106 = vector.broadcast %cst_22 : f32 to vector<2x64xf32>
    %107 = arith.subf %106, %98 : vector<2x64xf32>
    %108 = arith.mulf %107, %105 : vector<2x64xf32>
    %109 = arith.mulf %98, %80 : vector<2x64xf32>
    %110 = arith.addf %108, %109 : vector<2x64xf32>
    %cst_23 = arith.constant dense<0.000000e+00> : vector<2x192xf32>
    %111 = tpu.matmul %110, %13, %cst_23 {dimension_numbers = #tpu.dot_dimension_numbers<[1], [0], [0], [1], [0, 0, 1, 1], [], []>} : vector<2x64xf32>, vector<64x192xf32>, vector<2x192xf32> -> vector<2x192xf32>
    %112 = vector.extract_strided_slice %12 {offsets = [6, 0], sizes = [2, 192], strides = [1, 1]} : vector<16x192xf32> to vector<2x192xf32>
    %113 = vector.extract_strided_slice %112 {offsets = [0, 0], sizes = [2, 64], strides = [1, 1]} : vector<2x192xf32> to vector<2x64xf32>
    %114 = vector.extract_strided_slice %111 {offsets = [0, 0], sizes = [2, 64], strides = [1, 1]} : vector<2x192xf32> to vector<2x64xf32>
    %115 = arith.addf %113, %114 : vector<2x64xf32>
    %116 = arith.negf %115 : vector<2x64xf32>
    %117 = math.exp %116 : vector<2x64xf32>
    %cst_24 = arith.constant 1.000000e+00 : f32
    %118 = vector.broadcast %cst_24 : f32 to vector<2x64xf32>
    %119 = arith.addf %118, %117 : vector<2x64xf32>
    %120 = arith.divf %118, %119 : vector<2x64xf32>
    %121 = vector.extract_strided_slice %112 {offsets = [0, 64], sizes = [2, 64], strides = [1, 1]} : vector<2x192xf32> to vector<2x64xf32>
    %122 = vector.extract_strided_slice %111 {offsets = [0, 64], sizes = [2, 64], strides = [1, 1]} : vector<2x192xf32> to vector<2x64xf32>
    %123 = arith.addf %121, %122 : vector<2x64xf32>
    %124 = arith.negf %123 : vector<2x64xf32>
    %125 = math.exp %124 : vector<2x64xf32>
    %cst_25 = arith.constant 1.000000e+00 : f32
    %126 = vector.broadcast %cst_25 : f32 to vector<2x64xf32>
    %127 = arith.addf %126, %125 : vector<2x64xf32>
    %128 = arith.divf %126, %127 : vector<2x64xf32>
    %129 = vector.extract_strided_slice %112 {offsets = [0, 128], sizes = [2, 64], strides = [1, 1]} : vector<2x192xf32> to vector<2x64xf32>
    %130 = vector.extract_strided_slice %111 {offsets = [0, 128], sizes = [2, 64], strides = [1, 1]} : vector<2x192xf32> to vector<2x64xf32>
    %131 = vector.broadcast %14 : vector<1x64xf32> to vector<2x64xf32>
    %132 = arith.addf %130, %131 : vector<2x64xf32>
    %133 = arith.mulf %120, %132 : vector<2x64xf32>
    %134 = arith.addf %129, %133 : vector<2x64xf32>
    %135 = math.tanh %134 : vector<2x64xf32>
    %cst_26 = arith.constant 1.000000e+00 : f32
    %136 = vector.broadcast %cst_26 : f32 to vector<2x64xf32>
    %137 = arith.subf %136, %128 : vector<2x64xf32>
    %138 = arith.mulf %137, %135 : vector<2x64xf32>
    %139 = arith.mulf %128, %110 : vector<2x64xf32>
    %140 = arith.addf %138, %139 : vector<2x64xf32>
    %cst_27 = arith.constant dense<0.000000e+00> : vector<2x192xf32>
    %141 = tpu.matmul %140, %13, %cst_27 {dimension_numbers = #tpu.dot_dimension_numbers<[1], [0], [0], [1], [0, 0, 1, 1], [], []>} : vector<2x64xf32>, vector<64x192xf32>, vector<2x192xf32> -> vector<2x192xf32>
    %142 = vector.extract_strided_slice %12 {offsets = [8, 0], sizes = [2, 192], strides = [1, 1]} : vector<16x192xf32> to vector<2x192xf32>
    %143 = vector.extract_strided_slice %142 {offsets = [0, 0], sizes = [2, 64], strides = [1, 1]} : vector<2x192xf32> to vector<2x64xf32>
    %144 = vector.extract_strided_slice %141 {offsets = [0, 0], sizes = [2, 64], strides = [1, 1]} : vector<2x192xf32> to vector<2x64xf32>
    %145 = arith.addf %143, %144 : vector<2x64xf32>
    %146 = arith.negf %145 : vector<2x64xf32>
    %147 = math.exp %146 : vector<2x64xf32>
    %cst_28 = arith.constant 1.000000e+00 : f32
    %148 = vector.broadcast %cst_28 : f32 to vector<2x64xf32>
    %149 = arith.addf %148, %147 : vector<2x64xf32>
    %150 = arith.divf %148, %149 : vector<2x64xf32>
    %151 = vector.extract_strided_slice %142 {offsets = [0, 64], sizes = [2, 64], strides = [1, 1]} : vector<2x192xf32> to vector<2x64xf32>
    %152 = vector.extract_strided_slice %141 {offsets = [0, 64], sizes = [2, 64], strides = [1, 1]} : vector<2x192xf32> to vector<2x64xf32>
    %153 = arith.addf %151, %152 : vector<2x64xf32>
    %154 = arith.negf %153 : vector<2x64xf32>
    %155 = math.exp %154 : vector<2x64xf32>
    %cst_29 = arith.constant 1.000000e+00 : f32
    %156 = vector.broadcast %cst_29 : f32 to vector<2x64xf32>
    %157 = arith.addf %156, %155 : vector<2x64xf32>
    %158 = arith.divf %156, %157 : vector<2x64xf32>
    %159 = vector.extract_strided_slice %142 {offsets = [0, 128], sizes = [2, 64], strides = [1, 1]} : vector<2x192xf32> to vector<2x64xf32>
    %160 = vector.extract_strided_slice %141 {offsets = [0, 128], sizes = [2, 64], strides = [1, 1]} : vector<2x192xf32> to vector<2x64xf32>
    %161 = vector.broadcast %14 : vector<1x64xf32> to vector<2x64xf32>
    %162 = arith.addf %160, %161 : vector<2x64xf32>
    %163 = arith.mulf %150, %162 : vector<2x64xf32>
    %164 = arith.addf %159, %163 : vector<2x64xf32>
    %165 = math.tanh %164 : vector<2x64xf32>
    %cst_30 = arith.constant 1.000000e+00 : f32
    %166 = vector.broadcast %cst_30 : f32 to vector<2x64xf32>
    %167 = arith.subf %166, %158 : vector<2x64xf32>
    %168 = arith.mulf %167, %165 : vector<2x64xf32>
    %169 = arith.mulf %158, %140 : vector<2x64xf32>
    %170 = arith.addf %168, %169 : vector<2x64xf32>
    %cst_31 = arith.constant dense<0.000000e+00> : vector<2x192xf32>
    %171 = tpu.matmul %170, %13, %cst_31 {dimension_numbers = #tpu.dot_dimension_numbers<[1], [0], [0], [1], [0, 0, 1, 1], [], []>} : vector<2x64xf32>, vector<64x192xf32>, vector<2x192xf32> -> vector<2x192xf32>
    %172 = vector.extract_strided_slice %12 {offsets = [10, 0], sizes = [2, 192], strides = [1, 1]} : vector<16x192xf32> to vector<2x192xf32>
    %173 = vector.extract_strided_slice %172 {offsets = [0, 0], sizes = [2, 64], strides = [1, 1]} : vector<2x192xf32> to vector<2x64xf32>
    %174 = vector.extract_strided_slice %171 {offsets = [0, 0], sizes = [2, 64], strides = [1, 1]} : vector<2x192xf32> to vector<2x64xf32>
    %175 = arith.addf %173, %174 : vector<2x64xf32>
    %176 = arith.negf %175 : vector<2x64xf32>
    %177 = math.exp %176 : vector<2x64xf32>
    %cst_32 = arith.constant 1.000000e+00 : f32
    %178 = vector.broadcast %cst_32 : f32 to vector<2x64xf32>
    %179 = arith.addf %178, %177 : vector<2x64xf32>
    %180 = arith.divf %178, %179 : vector<2x64xf32>
    %181 = vector.extract_strided_slice %172 {offsets = [0, 64], sizes = [2, 64], strides = [1, 1]} : vector<2x192xf32> to vector<2x64xf32>
    %182 = vector.extract_strided_slice %171 {offsets = [0, 64], sizes = [2, 64], strides = [1, 1]} : vector<2x192xf32> to vector<2x64xf32>
    %183 = arith.addf %181, %182 : vector<2x64xf32>
    %184 = arith.negf %183 : vector<2x64xf32>
    %185 = math.exp %184 : vector<2x64xf32>
    %cst_33 = arith.constant 1.000000e+00 : f32
    %186 = vector.broadcast %cst_33 : f32 to vector<2x64xf32>
    %187 = arith.addf %186, %185 : vector<2x64xf32>
    %188 = arith.divf %186, %187 : vector<2x64xf32>
    %189 = vector.extract_strided_slice %172 {offsets = [0, 128], sizes = [2, 64], strides = [1, 1]} : vector<2x192xf32> to vector<2x64xf32>
    %190 = vector.extract_strided_slice %171 {offsets = [0, 128], sizes = [2, 64], strides = [1, 1]} : vector<2x192xf32> to vector<2x64xf32>
    %191 = vector.broadcast %14 : vector<1x64xf32> to vector<2x64xf32>
    %192 = arith.addf %190, %191 : vector<2x64xf32>
    %193 = arith.mulf %180, %192 : vector<2x64xf32>
    %194 = arith.addf %189, %193 : vector<2x64xf32>
    %195 = math.tanh %194 : vector<2x64xf32>
    %cst_34 = arith.constant 1.000000e+00 : f32
    %196 = vector.broadcast %cst_34 : f32 to vector<2x64xf32>
    %197 = arith.subf %196, %188 : vector<2x64xf32>
    %198 = arith.mulf %197, %195 : vector<2x64xf32>
    %199 = arith.mulf %188, %170 : vector<2x64xf32>
    %200 = arith.addf %198, %199 : vector<2x64xf32>
    %cst_35 = arith.constant dense<0.000000e+00> : vector<2x192xf32>
    %201 = tpu.matmul %200, %13, %cst_35 {dimension_numbers = #tpu.dot_dimension_numbers<[1], [0], [0], [1], [0, 0, 1, 1], [], []>} : vector<2x64xf32>, vector<64x192xf32>, vector<2x192xf32> -> vector<2x192xf32>
    %202 = vector.extract_strided_slice %12 {offsets = [12, 0], sizes = [2, 192], strides = [1, 1]} : vector<16x192xf32> to vector<2x192xf32>
    %203 = vector.extract_strided_slice %202 {offsets = [0, 0], sizes = [2, 64], strides = [1, 1]} : vector<2x192xf32> to vector<2x64xf32>
    %204 = vector.extract_strided_slice %201 {offsets = [0, 0], sizes = [2, 64], strides = [1, 1]} : vector<2x192xf32> to vector<2x64xf32>
    %205 = arith.addf %203, %204 : vector<2x64xf32>
    %206 = arith.negf %205 : vector<2x64xf32>
    %207 = math.exp %206 : vector<2x64xf32>
    %cst_36 = arith.constant 1.000000e+00 : f32
    %208 = vector.broadcast %cst_36 : f32 to vector<2x64xf32>
    %209 = arith.addf %208, %207 : vector<2x64xf32>
    %210 = arith.divf %208, %209 : vector<2x64xf32>
    %211 = vector.extract_strided_slice %202 {offsets = [0, 64], sizes = [2, 64], strides = [1, 1]} : vector<2x192xf32> to vector<2x64xf32>
    %212 = vector.extract_strided_slice %201 {offsets = [0, 64], sizes = [2, 64], strides = [1, 1]} : vector<2x192xf32> to vector<2x64xf32>
    %213 = arith.addf %211, %212 : vector<2x64xf32>
    %214 = arith.negf %213 : vector<2x64xf32>
    %215 = math.exp %214 : vector<2x64xf32>
    %cst_37 = arith.constant 1.000000e+00 : f32
    %216 = vector.broadcast %cst_37 : f32 to vector<2x64xf32>
    %217 = arith.addf %216, %215 : vector<2x64xf32>
    %218 = arith.divf %216, %217 : vector<2x64xf32>
    %219 = vector.extract_strided_slice %202 {offsets = [0, 128], sizes = [2, 64], strides = [1, 1]} : vector<2x192xf32> to vector<2x64xf32>
    %220 = vector.extract_strided_slice %201 {offsets = [0, 128], sizes = [2, 64], strides = [1, 1]} : vector<2x192xf32> to vector<2x64xf32>
    %221 = vector.broadcast %14 : vector<1x64xf32> to vector<2x64xf32>
    %222 = arith.addf %220, %221 : vector<2x64xf32>
    %223 = arith.mulf %210, %222 : vector<2x64xf32>
    %224 = arith.addf %219, %223 : vector<2x64xf32>
    %225 = math.tanh %224 : vector<2x64xf32>
    %cst_38 = arith.constant 1.000000e+00 : f32
    %226 = vector.broadcast %cst_38 : f32 to vector<2x64xf32>
    %227 = arith.subf %226, %218 : vector<2x64xf32>
    %228 = arith.mulf %227, %225 : vector<2x64xf32>
    %229 = arith.mulf %218, %200 : vector<2x64xf32>
    %230 = arith.addf %228, %229 : vector<2x64xf32>
    %cst_39 = arith.constant dense<0.000000e+00> : vector<2x192xf32>
    %231 = tpu.matmul %230, %13, %cst_39 {dimension_numbers = #tpu.dot_dimension_numbers<[1], [0], [0], [1], [0, 0, 1, 1], [], []>} : vector<2x64xf32>, vector<64x192xf32>, vector<2x192xf32> -> vector<2x192xf32>
    %232 = vector.extract_strided_slice %12 {offsets = [14, 0], sizes = [2, 192], strides = [1, 1]} : vector<16x192xf32> to vector<2x192xf32>
    %233 = vector.extract_strided_slice %232 {offsets = [0, 0], sizes = [2, 64], strides = [1, 1]} : vector<2x192xf32> to vector<2x64xf32>
    %234 = vector.extract_strided_slice %231 {offsets = [0, 0], sizes = [2, 64], strides = [1, 1]} : vector<2x192xf32> to vector<2x64xf32>
    %235 = arith.addf %233, %234 : vector<2x64xf32>
    %236 = arith.negf %235 : vector<2x64xf32>
    %237 = math.exp %236 : vector<2x64xf32>
    %cst_40 = arith.constant 1.000000e+00 : f32
    %238 = vector.broadcast %cst_40 : f32 to vector<2x64xf32>
    %239 = arith.addf %238, %237 : vector<2x64xf32>
    %240 = arith.divf %238, %239 : vector<2x64xf32>
    %241 = vector.extract_strided_slice %232 {offsets = [0, 64], sizes = [2, 64], strides = [1, 1]} : vector<2x192xf32> to vector<2x64xf32>
    %242 = vector.extract_strided_slice %231 {offsets = [0, 64], sizes = [2, 64], strides = [1, 1]} : vector<2x192xf32> to vector<2x64xf32>
    %243 = arith.addf %241, %242 : vector<2x64xf32>
    %244 = arith.negf %243 : vector<2x64xf32>
    %245 = math.exp %244 : vector<2x64xf32>
    %cst_41 = arith.constant 1.000000e+00 : f32
    %246 = vector.broadcast %cst_41 : f32 to vector<2x64xf32>
    %247 = arith.addf %246, %245 : vector<2x64xf32>
    %248 = arith.divf %246, %247 : vector<2x64xf32>
    %249 = vector.extract_strided_slice %232 {offsets = [0, 128], sizes = [2, 64], strides = [1, 1]} : vector<2x192xf32> to vector<2x64xf32>
    %250 = vector.extract_strided_slice %231 {offsets = [0, 128], sizes = [2, 64], strides = [1, 1]} : vector<2x192xf32> to vector<2x64xf32>
    %251 = vector.broadcast %14 : vector<1x64xf32> to vector<2x64xf32>
    %252 = arith.addf %250, %251 : vector<2x64xf32>
    %253 = arith.mulf %240, %252 : vector<2x64xf32>
    %254 = arith.addf %249, %253 : vector<2x64xf32>
    %255 = math.tanh %254 : vector<2x64xf32>
    %cst_42 = arith.constant 1.000000e+00 : f32
    %256 = vector.broadcast %cst_42 : f32 to vector<2x64xf32>
    %257 = arith.subf %256, %248 : vector<2x64xf32>
    %258 = arith.mulf %257, %255 : vector<2x64xf32>
    %259 = arith.mulf %248, %230 : vector<2x64xf32>
    %260 = arith.addf %258, %259 : vector<2x64xf32>
    %261 = vector.extract_strided_slice %50 {offsets = [0, 0], sizes = [2, 32], strides = [1, 1]} : vector<2x64xf32> to vector<2x32xf32>
    %262 = vector.extract_strided_slice %80 {offsets = [0, 0], sizes = [2, 32], strides = [1, 1]} : vector<2x64xf32> to vector<2x32xf32>
    %263 = vector.extract_strided_slice %110 {offsets = [0, 0], sizes = [2, 32], strides = [1, 1]} : vector<2x64xf32> to vector<2x32xf32>
    %264 = vector.extract_strided_slice %140 {offsets = [0, 0], sizes = [2, 32], strides = [1, 1]} : vector<2x64xf32> to vector<2x32xf32>
    %265 = vector.extract_strided_slice %170 {offsets = [0, 0], sizes = [2, 32], strides = [1, 1]} : vector<2x64xf32> to vector<2x32xf32>
    %266 = vector.extract_strided_slice %200 {offsets = [0, 0], sizes = [2, 32], strides = [1, 1]} : vector<2x64xf32> to vector<2x32xf32>
    %267 = vector.extract_strided_slice %230 {offsets = [0, 0], sizes = [2, 32], strides = [1, 1]} : vector<2x64xf32> to vector<2x32xf32>
    %268 = vector.extract_strided_slice %260 {offsets = [0, 0], sizes = [2, 32], strides = [1, 1]} : vector<2x64xf32> to vector<2x32xf32>
    %269 = vector.extract_strided_slice %260 {offsets = [0, 32], sizes = [2, 32], strides = [1, 1]} : vector<2x64xf32> to vector<2x32xf32>
    %270 = vector.extract_strided_slice %230 {offsets = [0, 32], sizes = [2, 32], strides = [1, 1]} : vector<2x64xf32> to vector<2x32xf32>
    %271 = vector.extract_strided_slice %200 {offsets = [0, 32], sizes = [2, 32], strides = [1, 1]} : vector<2x64xf32> to vector<2x32xf32>
    %272 = vector.extract_strided_slice %170 {offsets = [0, 32], sizes = [2, 32], strides = [1, 1]} : vector<2x64xf32> to vector<2x32xf32>
    %273 = vector.extract_strided_slice %140 {offsets = [0, 32], sizes = [2, 32], strides = [1, 1]} : vector<2x64xf32> to vector<2x32xf32>
    %274 = vector.extract_strided_slice %110 {offsets = [0, 32], sizes = [2, 32], strides = [1, 1]} : vector<2x64xf32> to vector<2x32xf32>
    %275 = vector.extract_strided_slice %80 {offsets = [0, 32], sizes = [2, 32], strides = [1, 1]} : vector<2x64xf32> to vector<2x32xf32>
    %276 = vector.extract_strided_slice %50 {offsets = [0, 32], sizes = [2, 32], strides = [1, 1]} : vector<2x64xf32> to vector<2x32xf32>
    %277 = vector.broadcast %15 : vector<1x32xf32> to vector<2x32xf32>
    %278 = arith.mulf %261, %277 : vector<2x32xf32>
    %cst_43 = arith.constant dense<0.000000e+00> : vector<2xf32>
    %279 = vector.multi_reduction <add>, %278, %cst_43 [1] : vector<2x32xf32> to vector<2xf32>
    %280 = vector.shape_cast %279 : vector<2xf32> to vector<2x1xf32>
    %281 = vector.broadcast %16 : vector<1x32xf32> to vector<2x32xf32>
    %282 = arith.mulf %269, %281 : vector<2x32xf32>
    %cst_44 = arith.constant dense<0.000000e+00> : vector<2xf32>
    %283 = vector.multi_reduction <add>, %282, %cst_44 [1] : vector<2x32xf32> to vector<2xf32>
    %284 = vector.shape_cast %283 : vector<2xf32> to vector<2x1xf32>
    %285 = arith.addf %280, %284 : vector<2x1xf32>
    %286 = vector.broadcast %15 : vector<1x32xf32> to vector<2x32xf32>
    %287 = arith.mulf %262, %286 : vector<2x32xf32>
    %cst_45 = arith.constant dense<0.000000e+00> : vector<2xf32>
    %288 = vector.multi_reduction <add>, %287, %cst_45 [1] : vector<2x32xf32> to vector<2xf32>
    %289 = vector.shape_cast %288 : vector<2xf32> to vector<2x1xf32>
    %290 = vector.broadcast %16 : vector<1x32xf32> to vector<2x32xf32>
    %291 = arith.mulf %270, %290 : vector<2x32xf32>
    %cst_46 = arith.constant dense<0.000000e+00> : vector<2xf32>
    %292 = vector.multi_reduction <add>, %291, %cst_46 [1] : vector<2x32xf32> to vector<2xf32>
    %293 = vector.shape_cast %292 : vector<2xf32> to vector<2x1xf32>
    %294 = arith.addf %289, %293 : vector<2x1xf32>
    %295 = vector.broadcast %15 : vector<1x32xf32> to vector<2x32xf32>
    %296 = arith.mulf %263, %295 : vector<2x32xf32>
    %cst_47 = arith.constant dense<0.000000e+00> : vector<2xf32>
    %297 = vector.multi_reduction <add>, %296, %cst_47 [1] : vector<2x32xf32> to vector<2xf32>
    %298 = vector.shape_cast %297 : vector<2xf32> to vector<2x1xf32>
    %299 = vector.broadcast %16 : vector<1x32xf32> to vector<2x32xf32>
    %300 = arith.mulf %271, %299 : vector<2x32xf32>
    %cst_48 = arith.constant dense<0.000000e+00> : vector<2xf32>
    %301 = vector.multi_reduction <add>, %300, %cst_48 [1] : vector<2x32xf32> to vector<2xf32>
    %302 = vector.shape_cast %301 : vector<2xf32> to vector<2x1xf32>
    %303 = arith.addf %298, %302 : vector<2x1xf32>
    %304 = vector.broadcast %15 : vector<1x32xf32> to vector<2x32xf32>
    %305 = arith.mulf %264, %304 : vector<2x32xf32>
    %cst_49 = arith.constant dense<0.000000e+00> : vector<2xf32>
    %306 = vector.multi_reduction <add>, %305, %cst_49 [1] : vector<2x32xf32> to vector<2xf32>
    %307 = vector.shape_cast %306 : vector<2xf32> to vector<2x1xf32>
    %308 = vector.broadcast %16 : vector<1x32xf32> to vector<2x32xf32>
    %309 = arith.mulf %272, %308 : vector<2x32xf32>
    %cst_50 = arith.constant dense<0.000000e+00> : vector<2xf32>
    %310 = vector.multi_reduction <add>, %309, %cst_50 [1] : vector<2x32xf32> to vector<2xf32>
    %311 = vector.shape_cast %310 : vector<2xf32> to vector<2x1xf32>
    %312 = arith.addf %307, %311 : vector<2x1xf32>
    %313 = vector.broadcast %15 : vector<1x32xf32> to vector<2x32xf32>
    %314 = arith.mulf %265, %313 : vector<2x32xf32>
    %cst_51 = arith.constant dense<0.000000e+00> : vector<2xf32>
    %315 = vector.multi_reduction <add>, %314, %cst_51 [1] : vector<2x32xf32> to vector<2xf32>
    %316 = vector.shape_cast %315 : vector<2xf32> to vector<2x1xf32>
    %317 = vector.broadcast %16 : vector<1x32xf32> to vector<2x32xf32>
    %318 = arith.mulf %273, %317 : vector<2x32xf32>
    %cst_52 = arith.constant dense<0.000000e+00> : vector<2xf32>
    %319 = vector.multi_reduction <add>, %318, %cst_52 [1] : vector<2x32xf32> to vector<2xf32>
    %320 = vector.shape_cast %319 : vector<2xf32> to vector<2x1xf32>
    %321 = arith.addf %316, %320 : vector<2x1xf32>
    %322 = vector.broadcast %15 : vector<1x32xf32> to vector<2x32xf32>
    %323 = arith.mulf %266, %322 : vector<2x32xf32>
    %cst_53 = arith.constant dense<0.000000e+00> : vector<2xf32>
    %324 = vector.multi_reduction <add>, %323, %cst_53 [1] : vector<2x32xf32> to vector<2xf32>
    %325 = vector.shape_cast %324 : vector<2xf32> to vector<2x1xf32>
    %326 = vector.broadcast %16 : vector<1x32xf32> to vector<2x32xf32>
    %327 = arith.mulf %274, %326 : vector<2x32xf32>
    %cst_54 = arith.constant dense<0.000000e+00> : vector<2xf32>
    %328 = vector.multi_reduction <add>, %327, %cst_54 [1] : vector<2x32xf32> to vector<2xf32>
    %329 = vector.shape_cast %328 : vector<2xf32> to vector<2x1xf32>
    %330 = arith.addf %325, %329 : vector<2x1xf32>
    %331 = vector.broadcast %15 : vector<1x32xf32> to vector<2x32xf32>
    %332 = arith.mulf %267, %331 : vector<2x32xf32>
    %cst_55 = arith.constant dense<0.000000e+00> : vector<2xf32>
    %333 = vector.multi_reduction <add>, %332, %cst_55 [1] : vector<2x32xf32> to vector<2xf32>
    %334 = vector.shape_cast %333 : vector<2xf32> to vector<2x1xf32>
    %335 = vector.broadcast %16 : vector<1x32xf32> to vector<2x32xf32>
    %336 = arith.mulf %275, %335 : vector<2x32xf32>
    %cst_56 = arith.constant dense<0.000000e+00> : vector<2xf32>
    %337 = vector.multi_reduction <add>, %336, %cst_56 [1] : vector<2x32xf32> to vector<2xf32>
    %338 = vector.shape_cast %337 : vector<2xf32> to vector<2x1xf32>
    %339 = arith.addf %334, %338 : vector<2x1xf32>
    %340 = vector.broadcast %15 : vector<1x32xf32> to vector<2x32xf32>
    %341 = arith.mulf %268, %340 : vector<2x32xf32>
    %cst_57 = arith.constant dense<0.000000e+00> : vector<2xf32>
    %342 = vector.multi_reduction <add>, %341, %cst_57 [1] : vector<2x32xf32> to vector<2xf32>
    %343 = vector.shape_cast %342 : vector<2xf32> to vector<2x1xf32>
    %344 = vector.broadcast %16 : vector<1x32xf32> to vector<2x32xf32>
    %345 = arith.mulf %276, %344 : vector<2x32xf32>
    %cst_58 = arith.constant dense<0.000000e+00> : vector<2xf32>
    %346 = vector.multi_reduction <add>, %345, %cst_58 [1] : vector<2x32xf32> to vector<2xf32>
    %347 = vector.shape_cast %346 : vector<2xf32> to vector<2x1xf32>
    %348 = arith.addf %343, %347 : vector<2x1xf32>
    %349 = arith.maximumf %285, %294 : vector<2x1xf32>
    %350 = arith.maximumf %349, %303 : vector<2x1xf32>
    %351 = arith.maximumf %350, %312 : vector<2x1xf32>
    %352 = arith.maximumf %351, %321 : vector<2x1xf32>
    %353 = arith.maximumf %352, %330 : vector<2x1xf32>
    %354 = arith.maximumf %353, %339 : vector<2x1xf32>
    %355 = arith.maximumf %354, %348 : vector<2x1xf32>
    %356 = arith.subf %285, %355 : vector<2x1xf32>
    %357 = math.exp %356 : vector<2x1xf32>
    %358 = arith.subf %294, %355 : vector<2x1xf32>
    %359 = math.exp %358 : vector<2x1xf32>
    %360 = arith.subf %303, %355 : vector<2x1xf32>
    %361 = math.exp %360 : vector<2x1xf32>
    %362 = arith.subf %312, %355 : vector<2x1xf32>
    %363 = math.exp %362 : vector<2x1xf32>
    %364 = arith.subf %321, %355 : vector<2x1xf32>
    %365 = math.exp %364 : vector<2x1xf32>
    %366 = arith.subf %330, %355 : vector<2x1xf32>
    %367 = math.exp %366 : vector<2x1xf32>
    %368 = arith.subf %339, %355 : vector<2x1xf32>
    %369 = math.exp %368 : vector<2x1xf32>
    %370 = arith.subf %348, %355 : vector<2x1xf32>
    %371 = math.exp %370 : vector<2x1xf32>
    %372 = arith.addf %357, %359 : vector<2x1xf32>
    %373 = arith.addf %372, %361 : vector<2x1xf32>
    %374 = arith.addf %373, %363 : vector<2x1xf32>
    %375 = arith.addf %374, %365 : vector<2x1xf32>
    %376 = arith.addf %375, %367 : vector<2x1xf32>
    %377 = arith.addf %376, %369 : vector<2x1xf32>
    %378 = arith.addf %377, %371 : vector<2x1xf32>
    %379 = vector.broadcast %357 : vector<2x1xf32> to vector<2x32xf32>
    %380 = arith.mulf %379, %261 : vector<2x32xf32>
    %381 = vector.broadcast %357 : vector<2x1xf32> to vector<2x32xf32>
    %382 = arith.mulf %381, %269 : vector<2x32xf32>
    %383 = vector.broadcast %359 : vector<2x1xf32> to vector<2x32xf32>
    %384 = arith.mulf %383, %262 : vector<2x32xf32>
    %385 = arith.addf %380, %384 : vector<2x32xf32>
    %386 = vector.broadcast %359 : vector<2x1xf32> to vector<2x32xf32>
    %387 = arith.mulf %386, %270 : vector<2x32xf32>
    %388 = arith.addf %382, %387 : vector<2x32xf32>
    %389 = vector.broadcast %361 : vector<2x1xf32> to vector<2x32xf32>
    %390 = arith.mulf %389, %263 : vector<2x32xf32>
    %391 = arith.addf %385, %390 : vector<2x32xf32>
    %392 = vector.broadcast %361 : vector<2x1xf32> to vector<2x32xf32>
    %393 = arith.mulf %392, %271 : vector<2x32xf32>
    %394 = arith.addf %388, %393 : vector<2x32xf32>
    %395 = vector.broadcast %363 : vector<2x1xf32> to vector<2x32xf32>
    %396 = arith.mulf %395, %264 : vector<2x32xf32>
    %397 = arith.addf %391, %396 : vector<2x32xf32>
    %398 = vector.broadcast %363 : vector<2x1xf32> to vector<2x32xf32>
    %399 = arith.mulf %398, %272 : vector<2x32xf32>
    %400 = arith.addf %394, %399 : vector<2x32xf32>
    %401 = vector.broadcast %365 : vector<2x1xf32> to vector<2x32xf32>
    %402 = arith.mulf %401, %265 : vector<2x32xf32>
    %403 = arith.addf %397, %402 : vector<2x32xf32>
    %404 = vector.broadcast %365 : vector<2x1xf32> to vector<2x32xf32>
    %405 = arith.mulf %404, %273 : vector<2x32xf32>
    %406 = arith.addf %400, %405 : vector<2x32xf32>
    %407 = vector.broadcast %367 : vector<2x1xf32> to vector<2x32xf32>
    %408 = arith.mulf %407, %266 : vector<2x32xf32>
    %409 = arith.addf %403, %408 : vector<2x32xf32>
    %410 = vector.broadcast %367 : vector<2x1xf32> to vector<2x32xf32>
    %411 = arith.mulf %410, %274 : vector<2x32xf32>
    %412 = arith.addf %406, %411 : vector<2x32xf32>
    %413 = vector.broadcast %369 : vector<2x1xf32> to vector<2x32xf32>
    %414 = arith.mulf %413, %267 : vector<2x32xf32>
    %415 = arith.addf %409, %414 : vector<2x32xf32>
    %416 = vector.broadcast %369 : vector<2x1xf32> to vector<2x32xf32>
    %417 = arith.mulf %416, %275 : vector<2x32xf32>
    %418 = arith.addf %412, %417 : vector<2x32xf32>
    %419 = vector.broadcast %371 : vector<2x1xf32> to vector<2x32xf32>
    %420 = arith.mulf %419, %268 : vector<2x32xf32>
    %421 = arith.addf %415, %420 : vector<2x32xf32>
    %422 = vector.broadcast %371 : vector<2x1xf32> to vector<2x32xf32>
    %423 = arith.mulf %422, %276 : vector<2x32xf32>
    %424 = arith.addf %418, %423 : vector<2x32xf32>
    %cst_59 = arith.constant dense<0.000000e+00> : vector<2x8xf32>
    %425 = tpu.matmul %421, %18, %cst_59 {dimension_numbers = #tpu.dot_dimension_numbers<[1], [0], [0], [1], [0, 0, 1, 1], [], []>} : vector<2x32xf32>, vector<32x8xf32>, vector<2x8xf32> -> vector<2x8xf32>
    %cst_60 = arith.constant dense<0.000000e+00> : vector<2x8xf32>
    %426 = tpu.matmul %424, %19, %cst_60 {dimension_numbers = #tpu.dot_dimension_numbers<[1], [0], [0], [1], [0, 0, 1, 1], [], []>} : vector<2x32xf32>, vector<32x8xf32>, vector<2x8xf32> -> vector<2x8xf32>
    %427 = arith.addf %425, %426 : vector<2x8xf32>
    %428 = vector.broadcast %378 : vector<2x1xf32> to vector<2x8xf32>
    %429 = arith.divf %427, %428 : vector<2x8xf32>
    %430 = vector.broadcast %17 : vector<1x8xf32> to vector<2x8xf32>
    %431 = arith.addf %429, %430 : vector<2x8xf32>
    %c0_61 = arith.constant 0 : index
    %c0_62 = arith.constant 0 : index
    %432 = vector.load %arg2[%c0_61, %c0_62] : memref<2x8xf32, #tpu.memory_space<vmem>>, vector<2x8xf32>
    tpu.vector_store %arg2[%c0_61, %c0_62], %431 {strides = array<i32>} : memref<2x8xf32, #tpu.memory_space<vmem>>, vector<2x8xf32>,
    return
  }
}

</mosaic_0001>

<bundles_post_ra>
// kernel: tpu_custom_call.1
= control target key start
LH: loop header
LB: loop body
LE: loop exit
PB: predicated region body
PF: predicated region fallthrough
CT: control target
= control target key end

     0   :  { %7 = vsyncpa [#allocation3], 0  ;;  %s2217_s0 = inlined_call_operand.vmem [shape: s32[16,2], index: 0, kind: input, shape index: {}]   ;;  %s2218_s1 = inlined_call_operand.hbm [shape: f32[264,192], index: 1, kind: input, shape index: {}]   ;;  %s2219_s2 = inlined_call_operand.hbm [shape: f32[2,8], index: 2, kind: output, shape index: {}]  }
   0x1   :  { %8 = vsyncpa [#allocation4], 0  ;;  %s1895_s9 = smov [#allocation2]   ;;  %s1847_s13 = scalar_lea.hbm %s2218_s1, 8448 }
   0x2   :  { %s16_s10 = sshll.u32 %s1895_s9, 4  ;;  %p1848_p0 = scmp.ne.s32.totalorder %s2218_s1, %s1847_s13  ;;  %s17_s10 = int_to_ptr.vmem [resolvable:$true] %s16_s10 }
   0x3   :  { %p1851_p1 = scmp.lt.u32.totalorder %s1847_s13, %s2218_s1 }
   0x5   :  { %p1853_p2 = pnand %p1851_p1, %p1848_p0 }
   0x7   :  { %1856 = shalt.err (!%p1853_p2)
}
   0x8   :  { %s1857_s18 = scalar_lea.vmem %s17_s10, 8448  ;;  %p1862_p4 = scmp.lt.s32.totalorder %s17_s10, %s17_s10 }
   0x9   :  { %p1858_p3 = scmp.ne.s32.totalorder %s17_s10, %s1857_s18  ;;  %p1863_p5 = scmp.lt.s32.totalorder %s1857_s18, %s1857_s18 }
   0xb   :  { %p1864_p6 = por %p1863_p5, %p1862_p4 }
   0xd   :  { %p1865_p7 = pnand %p1864_p6, %p1858_p3 }
   0xf   :  { %1868 = shalt.err (!%p1865_p7)
}
  0x10   :  { %s1896_s19 = smov 256   ;;  %s1897_s20 = smov 16  }
  0x11   :  { %22 = dma.hbm_to_vmem [thread:$0]  %s2218_s1, 8448, %s17_s10, [#allocation3], %s1896_s19, %s1896_s19, %s1897_s20  }
  0x12   :  { %1891 = dma.done.wait [#allocation3], 8448  }
  0x13   :  { %1892 = vsyncadd [#allocation3], 4294958848  ;;  %v1898_v0 = vmov 0   ;;  %v1899_v1 = vmov 1   ;;  %v26_v2 = vld [vmem:[%s2217_s0] sm:$0xff]  ;;  %v53_v3 = vld [vmem:[#allocation2 + $0x8] sm:$0xff] }
  0x14   :  { %1776 = vset.pattern.permute.xlu0 %v1898_v0  ;;  %1779 = vset.pattern.permute.xlu1 %v1899_v1  ;;  %v55_v4 = vld [vmem:[#allocation2 + $0x18] sm:$0xff]  ;;  %v52_v6 = vld [vmem:[#allocation2] sm:$0xff]  ;;  %v54_v7 = vld [vmem:[#allocation2 + $0x10] sm:$0xff]  ;;  %v1900_v24 = vmov 0.0   ;;  %s1902_s1 = smov 64   ;;  %vm188_vm3 = vcmask 523264  }
  0x15   :  { %31 = vperm.xlu0 %1776, %v26_v2   ;;  %v1591_v5 = vpack.c.bf16 %v55_v4, %v53_v3  ;;  %v57_v8 = vld [vmem:[#allocation2 + $0x28] sm:$0xff]  ;;  %v1593_v9 = vpack.c.bf16 %v54_v7, %v52_v6  ;;  %v59_v10 = vld [vmem:[#allocation2 + $0x38] sm:$0xff]  ;;  %v56_v11 = vld [vmem:[#allocation2 + $0x20] sm:$0xff]  ;;  %256 = vmatprep.mubr.f32.mxu1 %v1900_v24  ;;  %vm1041_vm7 = vcmask 259076   ;;  %vm1032_vm8 = vcmask 257026   ;;  %s1906_s27 = smov [#allocation5]  }
  0x16   :  { %v58_v12 = vld [vmem:[#allocation2 + $0x30] sm:$0xff]  ;;  %v1595_v13 = vpack.c.bf16 %v59_v10, %v57_v8  ;;  %v61_v14 = vld [vmem:[#allocation2 + $0x48] sm:$0xff]  ;;  %v63_v15 = vld [vmem:[#allocation2 + $0x58] sm:$0xff]  ;;  %148 = vmatprep.mubr.f32.mxu0 %v1900_v24  ;;  %vm1019_vm9 = vcmask 261126   ;;  %vm1010_vm10 = vcmask 254976   ;;  %vm1905_vm11 = vmmov 0  }
  0x17   :  { %1592 = vmatprep.subr.bf16.mxu0 %v1591_v5  ;;  %v1597_v16 = vpack.c.bf16 %v58_v12, %v56_v11  ;;  %v1599_v17 = vpack.c.bf16 %v63_v15, %v61_v14  ;;  %v60_v18 = vld [vmem:[#allocation2 + $0x40] sm:$0xff]  ;;  %v62_v19 = vld [vmem:[#allocation2 + $0x50] sm:$0xff]  ;;  %v162_v20 = vld [vmem:[#allocation2 + $0x108] sm:$0xff]  ;;  %vm1364_vm12 = vcmask 261120   ;;  %s1529_s28 = sshll.u32 %s1906_s27, 4  ;;  %vm1521_vm13 = vcmask 58368   ;;  %s1530_s28 = int_to_ptr.vmem [resolvable:$true] %s1529_s28 }
  0x18   :  { %1594 = vmatpush1.bf16.msra.mxu0 %v1593_v9  ;;  %v65_v21 = vld [vmem:[#allocation2 + $0x68] sm:$0xff]  ;;  %v67_v22 = vld [vmem:[#allocation2 + $0x78] sm:$0xff]  ;;  %v161_v26 = vld [vmem:[#allocation2 + $0x100] sm:$0xff]  ;;  %v1601_v28 = vpack.c.bf16 %v62_v19, %v60_v18  ;;  %s1869_s29 = scalar_lea.vmem %s1530_s28, 32  ;;  %p1874_p9 = scmp.lt.s32.totalorder %s1530_s28, %s1530_s28 }
  0x19   :  { %1777 = vset.pattern.permute.xlu0 %v1899_v1  ;;  %1596 = vmatprep.subr.bf16.mxu0 %v1595_v13  ;;  %v164_v23 = vld [vmem:[#allocation2 + $0x118] sm:$0xff]  ;;  %v163_v27 = vld [vmem:[#allocation2 + $0x110] sm:$0xff]  ;;  %v166_v30 = vld [vmem:[#allocation2 + $0x128] sm:$0xff]  ;;  %v1603_v32 = vpack.c.bf16 %v67_v22, %v65_v21  ;;  %v28_v13 = vlaneseq  ;;  %p1870_p8 = scmp.ne.s32.totalorder %s1530_s28, %s1869_s29  ;;  %p1875_p10 = scmp.lt.s32.totalorder %s1869_s29, %s1869_s29 }
  0x1a   :  { %39 = vperm.xlu0 %1777, %v26_v2   ;;  %v1939_v25 = vpack.c.bf16 %v164_v23, %v162_v20  ;;  %v1942_v29 = vpack.c.bf16 %v163_v27, %v161_v26  ;;  %v168_v31 = vld [vmem:[#allocation2 + $0x138] sm:$0xff]  ;;  %v64_v33 = vld [vmem:[#allocation2 + $0x60] sm:$0xff]  ;;  %v66_v34 = vld [vmem:[#allocation2 + $0x70] sm:$0xff] }
  0x1b   :  { %v1945_v35 = vpack.c.bf16 %v168_v31, %v166_v30  ;;  %v165_v36 = vld [vmem:[#allocation2 + $0x120] sm:$0xff]  ;;  %v69_v37 = vld [vmem:[#allocation2 + $0x88] sm:$0xff]  ;;  %v71_v38 = vld [vmem:[#allocation2 + $0x98] sm:$0xff]  ;;  %v1605_v43 = vpack.c.bf16 %v66_v34, %v64_v33  ;;  %v1977_v15 = vand.u32 127, %v28_v13  ;;  %p1876_p11 = por %p1875_p10, %p1874_p9 }
  0x1c   :  { %1598 = vmatpush1.bf16.msra.mxu0 %v1597_v16  ;;  %1624 = vmatprep.subr.bf16.mxu1 %v1939_v25  ;;  %v167_v39 = vld [vmem:[#allocation2 + $0x130] sm:$0xff]  ;;  %v170_v41 = vld [vmem:[#allocation2 + $0x148] sm:$0xff]  ;;  %v172_v42 = vld [vmem:[#allocation2 + $0x158] sm:$0xff]  ;;  %v1607_v47 = vpack.c.bf16 %v71_v38, %v69_v37 }
  0x1d   :  { %1600 = vmatprep.subr.bf16.mxu0 %v1599_v17  ;;  %1626 = vmatpush1.bf16.msra.mxu1 %v1942_v29  ;;  %v1950_v40 = vpack.c.bf16 %v167_v39, %v165_v36  ;;  %v1952_v44 = vpack.c.bf16 %v172_v42, %v170_v41  ;;  %v169_v45 = vld [vmem:[#allocation2 + $0x140] sm:$0xff]  ;;  %v171_v46 = vld [vmem:[#allocation2 + $0x150] sm:$0xff]  ;;  %v174_v50 = vld [vmem:[#allocation2 + $0x168] sm:$0xff]  ;;  %v1901_v17 = vmov 1.0   ;;  %p1877_p12 = pnand %p1876_p11, %p1870_p8 }
  0x1e   :  { %1778 = vset.pattern.permute.xlu0 %v1898_v0  ;;  %1628 = vmatprep.subr.bf16.mxu1 %v1945_v35  ;;  %v68_v48 = vld [vmem:[#allocation2 + $0x80] sm:$0xff]  ;;  %v70_v49 = vld [vmem:[#allocation2 + $0x90] sm:$0xff]  ;;  %v73_v51 = vld [vmem:[#allocation2 + $0xa8] sm:$0xff]  ;;  %v1955_v53 = vpack.c.bf16 %v171_v46, %v169_v45 }
  0x1f   :  { %v75_v52 = vld [vmem:[#allocation2 + $0xb8] sm:$0xff]  ;;  %v173_v56 = vld [vmem:[#allocation2 + $0x160] sm:$0xff]  ;;  %v175_v57 = vld [vmem:[#allocation2 + $0x170] sm:$0xff]  ;;  %v1609_v58 = vpack.c.bf16 %v70_v49, %v68_v48 }
  0x20   :  { %1602 = vmatpush1.bf16.msra.mxu0 %v1601_v28  ;;  %v176_v54 = vld [vmem:[#allocation2 + $0x178] sm:$0xff]  ;;  %v1611_v59 = vpack.c.bf16 %v75_v52, %v73_v51  ;;  %v72_v60 = vld [vmem:[#allocation2 + $0xa0] sm:$0xff]  ;;  %v74_v61 = vld [vmem:[#allocation2 + $0xb0] sm:$0xff]  ;;  %v1961_v1 = vpack.c.bf16 %v175_v57, %v173_v56 }
  0x21   :  { %1604 = vmatprep.subr.bf16.mxu0 %v1603_v32  ;;  %1630 = vmatpush1.bf16.msra.mxu1 %v1950_v40  ;;  %v1958_v55 = vpack.c.bf16 %v176_v54, %v174_v50  ;;  %v77_v62 = vld [vmem:[#allocation2 + $0xc8] sm:$0xff]  ;;  %v79_v63 = vld [vmem:[#allocation2 + $0xd8] sm:$0xff]  ;;  %v1613_v2 = vpack.c.bf16 %v74_v61, %v72_v60  ;;  %v76_v4 = vld [vmem:[#allocation2 + $0xc0] sm:$0xff] }
  0x22   :  { %1632 = vmatprep.subr.bf16.mxu1 %v1952_v44  ;;  %v1615_v3 = vpack.c.bf16 %v79_v63, %v77_v62  ;;  %v78_v5 = vld [vmem:[#allocation2 + $0xd0] sm:$0xff]  ;;  %v81_v6 = vld [vmem:[#allocation2 + $0xe8] sm:$0xff]  ;;  %v83_v7 = vld [vmem:[#allocation2 + $0xf8] sm:$0xff] }
  0x23   :  { %v1617_v8 = vpack.c.bf16 %v78_v5, %v76_v4  ;;  %v1619_v9 = vpack.c.bf16 %v83_v7, %v81_v6  ;;  %v80_v10 = vld [vmem:[#allocation2 + $0xe0] sm:$0xff]  ;;  %v82_v11 = vld [vmem:[#allocation2 + $0xf0] sm:$0xff] }
  0x24   :  { %1606 = vmatpush1.bf16.msra.mxu0 %v1605_v43  ;;  %v1621_v12 = vpack.c.bf16 %v82_v11, %v80_v10  ;;  %v1996_v28 = vld [vmem:[#allocation2 + $0x180] ss:$0 sm:$0xff]  ;;  %v27_v43 = vld [vmem:[%s2217_s0 + $0x8] sm:$0xff]  ;;  %s1903_s0 = smov 32  }
  0x25   :  { %1608 = vmatprep.subr.bf16.mxu0 %v1607_v47  ;;  %1634 = vmatpush1.bf16.msra.mxu1 %v1955_v53 }
  0x26   :  { %1636 = vmatprep.subr.bf16.mxu1 %v1958_v55  ;;  %34 = vperm.xlu0 %1778, %v27_v43  }
  0x28   :  { %1610 = vmatpush1.bf16.msra.mxu0 %v1609_v58 }
  0x29   :  { %1612 = vmatprep.subr.bf16.mxu0 %v1611_v59  ;;  %1638 = vmatpush1.bf16.msra.mxu1 %v1961_v1 }
  0x2a   :  { %1640 = vmatprep.subr.bf16.mxu1 %v1939_v25 }
  0x2c   :  { %1614 = vmatpush1.bf16.msra.mxu0 %v1613_v2  ;;  %257 = vmatmul.mubr.f32.vlgmr.msra.gmra.mrb[0].mxu1 %v1900_v24 }
  0x2d   :  { %1616 = vmatprep.subr.bf16.mxu0 %v1615_v3  ;;  %1642 = vmatpush1.bf16.msra.mxu1 %v1942_v29 }
  0x2e   :  { %351 = vmatprep.mubr.f32.mxu1 %v1900_v24  ;;  %1644 = vmatprep.subr.bf16.mxu1 %v1945_v35 }
  0x30   :  { %1618 = vmatpush1.bf16.msra.mxu0 %v1617_v8 }
  0x31   :  { %1620 = vmatprep.subr.bf16.mxu0 %v1619_v9  ;;  %1646 = vmatpush1.bf16.msra.mxu1 %v1950_v40 }
  0x32   :  { %1648 = vmatprep.subr.bf16.mxu1 %v1952_v44 }
  0x34   :  { %1622 = vmatpush1.bf16.msra.mxu0 %v1621_v12 }
  0x35   :  { %1656 = vmatprep.subr.bf16.mxu0 %v1939_v25  ;;  %1650 = vmatpush1.bf16.msra.mxu1 %v1955_v53 }
  0x36   :  { %1652 = vmatprep.subr.bf16.mxu1 %v1958_v55 }
  0x39   :  { %1654 = vmatpush1.bf16.msra.mxu1 %v1961_v1 }
  0x3a   :  { %1672 = vmatprep.subr.bf16.mxu1 %v1939_v25 }
  0x94   :  { %v32_v14 = vpop.permute.xlu0 %31 }
  0x95   :  { %vm36_vm0 = vcmp.eq.s32.totalorder %v1977_v15, %v32_v14 }
  0x99   :  { %v40_v16 = vpop.permute.xlu0 %39 }
  0x9a   :  { %vm44_vm1 = vcmp.eq.s32.totalorder %v1977_v15, %v40_v16 }
  0x9b   :  { %vm46_vm2 = vmor %vm36_vm0, %vm44_vm1 }
  0x9c   :  { %1540 = vmatmul.mubr.msk.f32.vlgmr.msra.gmra.mrb[0].mxu0 %vm46_vm2, %v1901_v17 }
  0x9d   :  { %1658 = vmatpush1.bf16.msra.mxu0 %v1942_v29  ;;  %154 = vmatprep.mubr.f32.mxu0 %v1900_v24 }
  0x9e   :  { %1660 = vmatprep.subr.bf16.mxu0 %v1945_v35 }
  0xa1   :  { %1662 = vmatpush1.bf16.msra.mxu0 %v1950_v40 }
  0xa2   :  { %1664 = vmatprep.subr.bf16.mxu0 %v1952_v44 }
  0xa5   :  { %1666 = vmatpush1.bf16.msra.mxu0 %v1955_v53  ;;  %v35_v5 = vpop.permute.xlu0 %34 }
  0xa6   :  { %1668 = vmatprep.subr.bf16.mxu0 %v1958_v55  ;;  %vm37_vm4 = vcmp.eq.s32.totalorder %v1977_v15, %v35_v5 }
  0xa9   :  { %1670 = vmatpush1.bf16.msra.mxu0 %v1961_v1 }
  0xaa   :  { %1688 = vmatprep.subr.bf16.mxu0 %v1939_v25 }
  0xff   :  { %v258_v18 = vpop.f32.mrb[0].mxu1 }
 0x100   :  { %v260_v19 = vpop.f32.mrb[1].mxu1 }
 0x101   :  { %v270_v30 = vadd.f32 %v260_v19, %v1996_v28 }
 0x16f   :  { %v1991_v20 = vpop.f32.mrb[0].mxu0 }
 0x170   :  { %v263_v21 = vadd.f32 %v258_v18, %v1991_v20  ;;  %v1994_v22 = vpop.f32.mrb[1].mxu0 }
 0x172   :  { %v1542_v23 = vmul.f32 -1.442695, %v263_v21 }
 0x174   :  { %1781 = vpow2.f32 %v1542_v23 }
 0x17e   :  { %v1782_v26 = vpop.eup %1781 }
 0x17f   :  { %v267_v27 = vadd.f32 1.0, %v1782_v26 }
 0x181   :  { %1783 = vrcp.f32 %v267_v27 }
 0x18b   :  { %v1784_v31 = vpop.eup %1783 }
 0x18c   :  { %v271_v32 = vmul.f32 %v1784_v31, %v270_v30  ;;  %v274_v36 = vsub.f32 1.0, %v1784_v31  ;;  %v280_v38 = vmul.f32 0.0, %v1784_v31 }
 0x18e   :  { %v272_v33 = vadd.f32 %v271_v32, %v1994_v22 }
 0x190   :  { %1785 = vtanh.f32 %v272_v33 }
 0x19a   :  { %v1786_v34 = vpop.eup %1785 }
 0x19b   :  { %276 = vrot.lane.b32.xlu1 %v1786_v34, %s1902_s1 }
 0x20d   :  { %v277_v37 = vpop.permute.xlu1 %276 }
 0x20e   :  { %v279_v39 = vmul.f32 %v277_v37, %v274_v36 }
 0x210   :  { %v2001_v41 = vadd.f32 %v280_v38, %v279_v39 }
 0x212   :  { %283 = vrot.lane.b32.xlu1 %v2001_v41, %s1902_s1  ;;  %v381_v61 = vrot.slane %v2001_v41, 6 }
 0x284   :  { %v284_v42 = vpop.permute.xlu1 %283 }
 0x285   :  { %1543 = vmatmul.mubr.msk.f32.vlgmr.msra.gmra.mrb[2].mxu1 %vm188_vm3, %v284_v42 }
 0x286   :  { %1674 = vmatpush1.bf16.msra.mxu1 %v1942_v29  ;;  %559 = vmatprep.mubr.f32.mxu1 %v1900_v24 }
 0x287   :  { %1676 = vmatprep.subr.bf16.mxu1 %v1945_v35 }
 0x28a   :  { %1678 = vmatpush1.bf16.msra.mxu1 %v1950_v40 }
 0x28b   :  { %1680 = vmatprep.subr.bf16.mxu1 %v1952_v44 }
 0x28e   :  { %1682 = vmatpush1.bf16.msra.mxu1 %v1955_v53 }
 0x28f   :  { %1684 = vmatprep.subr.bf16.mxu1 %v1958_v55 }
 0x292   :  { %1686 = vmatpush1.bf16.msra.mxu1 %v1961_v1 }
 0x293   :  { %1704 = vmatprep.subr.bf16.mxu1 %v1939_v25 }
 0x358   :  { %v353_v45 = vpop.f32.mrb[2].mxu1 }
 0x359   :  { %v359_v46 = vrot.slane %v353_v45, 6  ;;  %v355_v47 = vpop.f32.mrb[3].mxu1 }
 0x35a   :  { %v368_v52 = vadd.f32 %v355_v47, %v1996_v28 }
 0x35b   :  { %v361_v48 = vadd.f32 %v359_v46, %v1991_v20 }
 0x35c   :  { %v370_v54 = vrot.slane %v368_v52, 6 }
 0x35d   :  { %v1544_v49 = vmul.f32 -1.442695, %v361_v48 }
 0x35f   :  { %1787 = vpow2.f32 %v1544_v49 }
 0x369   :  { %v1788_v50 = vpop.eup %1787 }
 0x36a   :  { %v365_v51 = vadd.f32 1.0, %v1788_v50 }
 0x36c   :  { %1789 = vrcp.f32 %v365_v51 }
 0x376   :  { %v1790_v56 = vpop.eup %1789 }
 0x377   :  { %v372_v57 = vmul.f32 %v1790_v56, %v370_v54  ;;  %v375_v60 = vsub.f32 1.0, %v1790_v56  ;;  %v383_v2 = vmul.f32 %v1790_v56, %v381_v61 }
 0x379   :  { %v373_v58 = vadd.f32 %v372_v57, %v1994_v22 }
 0x37b   :  { %1791 = vtanh.f32 %v373_v58 }
 0x385   :  { %v1792_v59 = vpop.eup %1791 }
 0x386   :  { %377 = vrot.lane.b32.xlu1 %v1792_v59, %s1902_s1 }
 0x38a   :  { %42 = vperm.xlu1 %1779, %v27_v43  }
 0x38e   :  { %1780 = vset.pattern.permute.xlu1 %v1898_v0 }
 0x3f8   :  { %v378_v62 = vpop.permute.xlu1 %377 }
 0x3f9   :  { %v380_v63 = vmul.f32 %v378_v62, %v375_v60 }
 0x3fb   :  { %v2024_v3 = vadd.f32 %v383_v2, %v380_v63 }
 0x3fd   :  { %v386_v4 = vrot.slane %v2024_v3, 2  ;;  %v485_v27 = vrot.slane %v2024_v3, 6 }
 0x3ff   :  { %387 = vrot.lane.b32.xlu1 %v386_v4, %s1902_s1 }
 0x409   :  { %v43_v6 = vpop.permute.xlu1 %42 }
 0x40a   :  { %vm45_vm5 = vcmp.eq.s32.totalorder %v1977_v15, %v43_v6 }
 0x40b   :  { %vm47_vm6 = vmor %vm37_vm4, %vm45_vm5 }
 0x40c   :  { %1541 = vmatmul.mubr.msk.f32.gmra.mrb[2].mxu0 %vm47_vm6, %v1901_v17 }
 0x40d   :  { %455 = vmatprep.mubr.f32.mxu0 %v1900_v24 }
 0x471   :  { %v388_v0 = vpop.permute.xlu1 %387 }
 0x472   :  { %1545 = vmatmul.mubr.msk.f32.vlgmr.msra.gmra.mrb[4].mxu0 %vm188_vm3, %v388_v0 }
 0x473   :  { %1690 = vmatpush1.bf16.msra.mxu0 %v1942_v29  ;;  %663 = vmatprep.mubr.f32.mxu0 %v1900_v24 }
 0x474   :  { %1692 = vmatprep.subr.bf16.mxu0 %v1945_v35 }
 0x477   :  { %1694 = vmatpush1.bf16.msra.mxu0 %v1950_v40 }
 0x478   :  { %1696 = vmatprep.subr.bf16.mxu0 %v1952_v44 }
 0x47b   :  { %1698 = vmatpush1.bf16.msra.mxu0 %v1955_v53 }
 0x47c   :  { %1700 = vmatprep.subr.bf16.mxu0 %v1958_v55 }
 0x47f   :  { %1702 = vmatpush1.bf16.msra.mxu0 %v1961_v1 }
 0x480   :  { %1720 = vmatprep.subr.bf16.mxu0 %v1939_v25 }
 0x4df   :  { %v2042_v7 = vpop.f32.mrb[2].mxu0 }
 0x4e0   :  { %v2044_v8 = vpop.f32.mrb[3].mxu0 }
 0x545   :  { %v457_v9 = vpop.f32.mrb[4].mxu0 }
 0x546   :  { %v463_v10 = vrot.slane %v457_v9, 4  ;;  %v459_v11 = vpop.f32.mrb[5].mxu0 }
 0x547   :  { %v472_v16 = vadd.f32 %v459_v11, %v1996_v28 }
 0x548   :  { %v465_v12 = vadd.f32 %v463_v10, %v1991_v20 }
 0x549   :  { %v474_v17 = vrot.slane %v472_v16, 4 }
 0x54a   :  { %v1546_v13 = vmul.f32 -1.442695, %v465_v12 }
 0x54c   :  { %1793 = vpow2.f32 %v1546_v13 }
 0x556   :  { %v1794_v14 = vpop.eup %1793 }
 0x557   :  { %v469_v15 = vadd.f32 1.0, %v1794_v14 }
 0x559   :  { %1795 = vrcp.f32 %v469_v15 }
 0x563   :  { %v1796_v18 = vpop.eup %1795 }
 0x564   :  { %v476_v19 = vmul.f32 %v1796_v18, %v474_v17  ;;  %v479_v26 = vsub.f32 1.0, %v1796_v18  ;;  %v487_v31 = vmul.f32 %v1796_v18, %v485_v27 }
 0x566   :  { %v477_v21 = vadd.f32 %v476_v19, %v1994_v22 }
 0x568   :  { %1797 = vtanh.f32 %v477_v21 }
 0x572   :  { %v1798_v23 = vpop.eup %1797 }
 0x573   :  { %481 = vrot.lane.b32.xlu0 %v1798_v23, %s1902_s1 }
 0x5e5   :  { %v482_v30 = vpop.permute.xlu0 %481 }
 0x5e6   :  { %v484_v32 = vmul.f32 %v482_v30, %v479_v26 }
 0x5e8   :  { %v2053_v33 = vadd.f32 %v487_v31, %v484_v32 }
 0x5ea   :  { %v490_v34 = vrot.slane %v2053_v33, 4  ;;  %v589_v54 = vrot.slane %v2053_v33, 6 }
 0x5ec   :  { %491 = vrot.lane.b32.xlu1 %v490_v34, %s1902_s1 }
 0x65e   :  { %v492_v36 = vpop.permute.xlu1 %491 }
 0x65f   :  { %1547 = vmatmul.mubr.msk.f32.vlgmr.msra.gmra.mrb[4].mxu1 %vm188_vm3, %v492_v36 }
 0x660   :  { %1706 = vmatpush1.bf16.msra.mxu1 %v1942_v29  ;;  %759 = vmatprep.mubr.f32.mxu1 %v1900_v24 }
 0x661   :  { %1708 = vmatprep.subr.bf16.mxu1 %v1945_v35 }
 0x664   :  { %1710 = vmatpush1.bf16.msra.mxu1 %v1950_v40 }
 0x665   :  { %1712 = vmatprep.subr.bf16.mxu1 %v1952_v44 }
 0x668   :  { %1714 = vmatpush1.bf16.msra.mxu1 %v1955_v53 }
 0x669   :  { %1716 = vmatprep.subr.bf16.mxu1 %v1958_v55 }
 0x66c   :  { %1718 = vmatpush1.bf16.msra.mxu1 %v1961_v1 }
 0x66d   :  { %1736 = vmatprep.subr.bf16.mxu1 %v1939_v25 }
 0x732   :  { %v561_v37 = vpop.f32.mrb[4].mxu1 }
 0x733   :  { %v567_v38 = vrot.slane %v561_v37, 2  ;;  %v563_v39 = vpop.f32.mrb[5].mxu1 }
 0x734   :  { %v576_v47 = vadd.f32 %v563_v39, %v1996_v28 }
 0x735   :  { %v569_v42 = vadd.f32 %v567_v38, %v1991_v20 }
 0x736   :  { %v578_v48 = vrot.slane %v576_v47, 2 }
 0x737   :  { %v1548_v43 = vmul.f32 -1.442695, %v569_v42 }
 0x739   :  { %1799 = vpow2.f32 %v1548_v43 }
 0x743   :  { %v1800_v45 = vpop.eup %1799 }
 0x744   :  { %v573_v46 = vadd.f32 1.0, %v1800_v45 }
 0x746   :  { %1801 = vrcp.f32 %v573_v46 }
 0x750   :  { %v1802_v49 = vpop.eup %1801 }
 0x751   :  { %v580_v50 = vmul.f32 %v1802_v49, %v578_v48  ;;  %v583_v25 = vsub.f32 1.0, %v1802_v49  ;;  %v591_v56 = vmul.f32 %v1802_v49, %v589_v54 }
 0x753   :  { %v581_v51 = vadd.f32 %v580_v50, %v1994_v22 }
 0x755   :  { %1803 = vtanh.f32 %v581_v51 }
 0x75f   :  { %v1804_v52 = vpop.eup %1803 }
 0x760   :  { %585 = vrot.lane.b32.xlu0 %v1804_v52, %s1902_s1 }
 0x7d2   :  { %v586_v20 = vpop.permute.xlu0 %585 }
 0x7d3   :  { %v588_v57 = vmul.f32 %v586_v20, %v583_v25 }
 0x7d5   :  { %v2072_v58 = vadd.f32 %v591_v56, %v588_v57 }
 0x7d7   :  { %v2075_v59 = vrot.slane %v2072_v58, 6 }
 0x7d9   :  { %595 = vrot.lane.b32.xlu1 %v2075_v59, %s1902_s1 }
 0x84b   :  { %v596_v60 = vpop.permute.xlu1 %595 }
 0x84c   :  { %1549 = vmatmul.mubr.msk.f32.vlgmr.msra.gmra.mrb[6].mxu0 %vm188_vm3, %v596_v60 }
 0x84d   :  { %1722 = vmatpush1.bf16.msra.mxu0 %v1942_v29  ;;  %863 = vmatprep.mubr.f32.mxu0 %v1900_v24 }
 0x84e   :  { %1724 = vmatprep.subr.bf16.mxu0 %v1945_v35 }
 0x851   :  { %1726 = vmatpush1.bf16.msra.mxu0 %v1950_v40 }
 0x852   :  { %1728 = vmatprep.subr.bf16.mxu0 %v1952_v44 }
 0x855   :  { %1730 = vmatpush1.bf16.msra.mxu0 %v1955_v53 }
 0x856   :  { %1732 = vmatprep.subr.bf16.mxu0 %v1958_v55 }
 0x859   :  { %1734 = vmatpush1.bf16.msra.mxu0 %v1961_v1 }
 0x91f   :  { %v665_v22 = vpop.f32.mrb[6].mxu0 }
 0x920   :  { %v670_v61 = vadd.f32 %v665_v22, %v2042_v7  ;;  %v667_v62 = vpop.f32.mrb[7].mxu0 }
 0x921   :  { %v677_v5 = vadd.f32 %v667_v62, %v1996_v28 }
 0x922   :  { %v1550_v63 = vmul.f32 -1.442695, %v670_v61 }
 0x924   :  { %1805 = vpow2.f32 %v1550_v63 }
 0x92e   :  { %v1806_v2 = vpop.eup %1805 }
 0x92f   :  { %v674_v4 = vadd.f32 1.0, %v1806_v2  ;;  %v178_v2 = vld [vmem:[#allocation2 + $0x181] ss:$0 sm:$0xff] }
 0x931   :  { %1807 = vrcp.f32 %v674_v4 }
 0x93b   :  { %v1808_v6 = vpop.eup %1807 }
 0x93c   :  { %v678_v0 = vmul.f32 %v1808_v6, %v677_v5  ;;  %v681_v11 = vsub.f32 1.0, %v1808_v6  ;;  %v688_v13 = vmul.f32 %v1808_v6, %v2075_v59 }
 0x93e   :  { %v679_v9 = vadd.f32 %v678_v0, %v2044_v8 }
 0x940   :  { %1809 = vtanh.f32 %v679_v9 }
 0x94a   :  { %v1810_v10 = vpop.eup %1809 }
 0x94b   :  { %683 = vrot.lane.b32.xlu0 %v1810_v10, %s1902_s1 }
 0x9bd   :  { %v684_v12 = vpop.permute.xlu0 %683 }
 0x9be   :  { %v686_v14 = vmul.f32 %v684_v12, %v681_v11 }
 0x9c0   :  { %v2093_v15 = vadd.f32 %v688_v13, %v686_v14 }
 0x9c2   :  { %691 = vrot.lane.b32.xlu1 %v2093_v15, %s1902_s1  ;;  %v789_v31 = vrot.slane %v2093_v15, 6 }
 0xa34   :  { %v692_v16 = vpop.permute.xlu1 %691 }
 0xa35   :  { %1551 = vmatmul.mubr.msk.f32.vlgmr.msra.gmra.mrb[6].mxu1 %vm188_vm3, %v692_v16 }
 0xa36   :  { %1738 = vmatpush1.bf16.msra.mxu1 %v1942_v29  ;;  %967 = vmatprep.mubr.f32.mxu1 %v1900_v24 }
 0xa37   :  { %1740 = vmatprep.subr.bf16.mxu1 %v1945_v35 }
 0xa3a   :  { %1742 = vmatpush1.bf16.msra.mxu1 %v1950_v40 }
 0xa3b   :  { %1744 = vmatprep.subr.bf16.mxu1 %v1952_v44 }
 0xa3e   :  { %1746 = vmatpush1.bf16.msra.mxu1 %v1955_v53 }
 0xa3f   :  { %1748 = vmatprep.subr.bf16.mxu1 %v1958_v55 }
 0xa42   :  { %1750 = vmatpush1.bf16.msra.mxu1 %v1961_v1 }
 0xb08   :  { %v761_v17 = vpop.f32.mrb[6].mxu1 }
 0xb09   :  { %v767_v18 = vrot.slane %v761_v17, 6  ;;  %v763_v19 = vpop.f32.mrb[7].mxu1 }
 0xb0a   :  { %v776_v35 = vadd.f32 %v763_v19, %v1996_v28 }
 0xb0b   :  { %v769_v21 = vadd.f32 %v767_v18, %v2042_v7 }
 0xb0c   :  { %v778_v40 = vrot.slane %v776_v35, 6 }
 0xb0d   :  { %v1552_v29 = vmul.f32 -1.442695, %v769_v21 }
 0xb0f   :  { %1811 = vpow2.f32 %v1552_v29 }
 0xb19   :  { %v1812_v23 = vpop.eup %1811 }
 0xb1a   :  { %v773_v26 = vadd.f32 1.0, %v1812_v23 }
 0xb1c   :  { %1813 = vrcp.f32 %v773_v26 }
 0xb26   :  { %v1814_v44 = vpop.eup %1813 }
 0xb27   :  { %v780_v30 = vmul.f32 %v1814_v44, %v778_v40  ;;  %v783_v1 = vsub.f32 1.0, %v1814_v44  ;;  %v791_v36 = vmul.f32 %v1814_v44, %v789_v31 }
 0xb29   :  { %v781_v53 = vadd.f32 %v780_v30, %v2044_v8 }
 0xb2b   :  { %1815 = vtanh.f32 %v781_v53 }
 0xb35   :  { %v1816_v55 = vpop.eup %1815 }
 0xb36   :  { %785 = vrot.lane.b32.xlu0 %v1816_v55, %s1902_s1 }
 0xba8   :  { %v786_v32 = vpop.permute.xlu0 %785 }
 0xba9   :  { %v788_v34 = vmul.f32 %v786_v32, %v783_v1 }
 0xbab   :  { %v2111_v37 = vadd.f32 %v791_v36, %v788_v34 }
 0xbad   :  { %v794_v38 = vrot.slane %v2111_v37, 2  ;;  %v893_v57 = vrot.slane %v2111_v37, 6 }
 0xbaf   :  { %795 = vrot.lane.b32.xlu1 %v794_v38, %s1902_s1 }
 0xc21   :  { %v796_v39 = vpop.permute.xlu1 %795 }
 0xc22   :  { %1553 = vmatmul.mubr.msk.f32.vlgmr.msra.gmra.mrb[8].mxu0 %vm188_vm3, %v796_v39 }
 0xc23   :  { %1588 = vmatprep.mubr.msk.f32.mxu0 %vm1905_vm11, %v1900_v24 }
 0xcf5   :  { %v865_v42 = vpop.f32.mrb[8].mxu0 }
 0xcf6   :  { %v871_v43 = vrot.slane %v865_v42, 4  ;;  %v867_v45 = vpop.f32.mrb[9].mxu0 }
 0xcf7   :  { %v880_v50 = vadd.f32 %v867_v45, %v1996_v28 }
 0xcf8   :  { %v873_v46 = vadd.f32 %v871_v43, %v2042_v7 }
 0xcf9   :  { %v882_v51 = vrot.slane %v880_v50, 4 }
 0xcfa   :  { %v1554_v47 = vmul.f32 -1.442695, %v873_v46 }
 0xcfc   :  { %1817 = vpow2.f32 %v1554_v47 }
 0xd06   :  { %v1818_v48 = vpop.eup %1817 }
 0xd07   :  { %v877_v49 = vadd.f32 1.0, %v1818_v48 }
 0xd09   :  { %1819 = vrcp.f32 %v877_v49 }
 0xd13   :  { %v1820_v52 = vpop.eup %1819 }
 0xd14   :  { %v884_v25 = vmul.f32 %v1820_v52, %v882_v51  ;;  %v887_v56 = vsub.f32 1.0, %v1820_v52  ;;  %v895_v22 = vmul.f32 %v1820_v52, %v893_v57 }
 0xd16   :  { %v885_v54 = vadd.f32 %v884_v25, %v2044_v8 }
 0xd18   :  { %1821 = vtanh.f32 %v885_v54 }
 0xd22   :  { %v1822_v20 = vpop.eup %1821 }
 0xd23   :  { %889 = vrot.lane.b32.xlu0 %v1822_v20, %s1902_s1 }
 0xd95   :  { %v890_v60 = vpop.permute.xlu0 %889 }
 0xd96   :  { %v892_v61 = vmul.f32 %v890_v60, %v887_v56 }
 0xd98   :  { %v2123_v62 = vadd.f32 %v895_v22, %v892_v61 }
 0xd9a   :  { %v898_v63 = vrot.slane %v2123_v62, 4  ;;  %v997_v44 = vrot.slane %v2123_v62, 6 }
 0xd9c   :  { %899 = vrot.lane.b32.xlu1 %v898_v63, %s1902_s1 }
 0xda0   :  { %1002 = vrot.lane.b32.xlu1 %v178_v2, %s1902_s1 }
 0xe0e   :  { %v900_v4 = vpop.permute.xlu1 %899 }
 0xe0f   :  { %1555 = vmatmul.mubr.msk.f32.vlgmr.msra.gmra.mrb[8].mxu1 %vm188_vm3, %v900_v4 }
 0xe10   :  { %1577 = vmatprep.mubr.msk.f32.mxu1 %vm1905_vm11, %v1900_v24 }
 0xe12   :  { %v1003_v5 = vpop.permute.xlu1 %1002 }
 0xe13   :  { %v1057_v6 = vmul.f32 %v1003_v5, %v2111_v37  ;;  %v1049_v0 = vmul.f32 %v1003_v5, %v2053_v33  ;;  %v1069_v9 = vmul.f32 %v1003_v5, %v2072_v58  ;;  %v1036_v35 = vmul.f32 %v1003_v5, %v2123_v62 }
 0xe14   :  { %v1005_v40 = vmul.f32 %v1003_v5, %v2001_v41 }
 0xe15   :  { %1059 = vrot.lane.b32.xlu1 %v1057_v6, %s1903_s0 }
 0xe19   :  { %1051 = vrot.lane.b32.xlu1 %v1049_v0, %s1902_s1 }
 0xe1d   :  { %1071 = vrot.lane.b32.xlu1 %v1069_v9, %s1902_s1 }
 0xe21   :  { %1111 = vrot.lane.b32.xlu1 %v1049_v0, %s1903_s0 }
 0xe87   :  { %v1060_v31 = vpop.permute.xlu1 %1059 }
 0xe88   :  { %v1062_v43 = vsel %vm1032_vm8, %v1060_v31, 0.0 }
 0xe8b   :  { %v1052_v42 = vpop.permute.xlu1 %1051 }
 0xe8c   :  { %v1054_v46 = vsel %vm1041_vm7, %v1052_v42, 0.0 }
 0xe8f   :  { %v1072_v45 = vpop.permute.xlu1 %1071 }
 0xe90   :  { %v1074_v47 = vsel %vm1019_vm9, %v1072_v45, 0.0 }
 0xe93   :  { %v1112_v48 = vpop.permute.xlu1 %1111 }
 0xe94   :  { %v1114_v49 = vsel %vm1041_vm7, %v1112_v48, 0.0 }
 0xee2   :  { %v969_v10 = vpop.f32.mrb[8].mxu1 }
 0xee3   :  { %v975_v11 = vrot.slane %v969_v10, 2  ;;  %v971_v12 = vpop.f32.mrb[9].mxu1 }
 0xee4   :  { %v984_v18 = vadd.f32 %v971_v12, %v1996_v28  ;;  %v1077_v28 = vmul.f32 %v1003_v5, %v2093_v15 }
 0xee5   :  { %v977_v13 = vadd.f32 %v975_v11, %v2042_v7  ;;  %v1027_v7 = vmul.f32 %v1003_v5, %v2024_v3 }
 0xee6   :  { %v986_v19 = vrot.slane %v984_v18, 2 }
 0xee7   :  { %v1556_v14 = vmul.f32 -1.442695, %v977_v13 }
 0xee9   :  { %1823 = vpow2.f32 %v1556_v14 }
 0xef3   :  { %v1824_v16 = vpop.eup %1823 }
 0xef4   :  { %v981_v17 = vadd.f32 1.0, %v1824_v16 }
 0xef6   :  { %1825 = vrcp.f32 %v981_v17 }
 0xf00   :  { %v1826_v21 = vpop.eup %1825 }
 0xf01   :  { %v988_v29 = vmul.f32 %v1826_v21, %v986_v19  ;;  %v999_v53 = vmul.f32 %v1826_v21, %v997_v44 }
 0xf03   :  { %v989_v23 = vadd.f32 %v988_v29, %v2044_v8  ;;  %v991_v8 = vsub.f32 1.0, %v1826_v21 }
 0xf05   :  { %1827 = vtanh.f32 %v989_v23 }
 0xf0f   :  { %v1828_v26 = vpop.eup %1827 }
 0xf10   :  { %993 = vrot.lane.b32.xlu0 %v1828_v26, %s1902_s1 }
 0xf14   :  { %1038 = vrot.lane.b32.xlu0 %v1036_v35, %s1903_s0 }
 0xf18   :  { %1029 = vrot.lane.b32.xlu0 %v1027_v7, %s1902_s1 }
 0xf1c   :  { %1007 = vrot.lane.b32.xlu0 %v1005_v40, %s1902_s1 }
 0xf20   :  { %1079 = vrot.lane.b32.xlu0 %v1077_v28, %s1903_s0 }
 0xf24   :  { %1095 = vrot.lane.b32.xlu0 %v1069_v9, %s1903_s0 }
 0xf28   :  { %1089 = vrot.lane.b32.xlu0 %v1077_v28, %s1902_s1 }
 0xf2c   :  { %1127 = vrot.lane.b32.xlu0 %v1027_v7, %s1903_s0 }
 0xf30   :  { %1143 = vrot.lane.b32.xlu0 %v1005_v40, %s1903_s0 }
 0xf82   :  { %v994_v30 = vpop.permute.xlu0 %993 }
 0xf83   :  { %v996_v55 = vmul.f32 %v994_v30, %v991_v8 }
 0xf85   :  { %v2153_v1 = vadd.f32 %v999_v53, %v996_v55 }
 0xf86   :  { %v1039_v32 = vpop.permute.xlu0 %1038 }
 0xf87   :  { %v1042_v34 = vsel %vm1041_vm7, %v1039_v32, 0.0  ;;  %v1014_v36 = vmul.f32 %v1003_v5, %v2153_v1  ;;  %v1241_v13 = vrot.slane %v2153_v1, 6 }
 0xf88   :  { %1043 = vadd.xlane.f32.xlu0 %v1042_v34 }
 0xf89   :  { %1016 = vrot.lane.b32.xlu1 %v1014_v36, %s1903_s0 }
 0xf8a   :  { %v1030_v38 = vpop.permute.xlu0 %1029 }
 0xf8b   :  { %v1033_v39 = vsel %vm1032_vm8, %v1030_v38, 0.0 }
 0xf8c   :  { %1034 = vadd.xlane.f32.xlu0 %v1033_v39 }
 0xf8d   :  { %1105 = vrot.lane.b32.xlu1 %v1057_v6, %s1902_s1 }
 0xf8e   :  { %v1008_v50 = vpop.permute.xlu0 %1007 }
 0xf8f   :  { %v1011_v52 = vsel %vm1010_vm10, %v1008_v50, 0.0 }
 0xf90   :  { %1063 = vadd.xlane.f32.xlu0 %v1062_v43 }
 0xf91   :  { %1121 = vrot.lane.b32.xlu1 %v1036_v35, %s1902_s1 }
 0xf92   :  { %v1080_v51 = vpop.permute.xlu0 %1079 }
 0xf93   :  { %v1082_v25 = vsel %vm1010_vm10, %v1080_v51, 0.0 }
 0xf94   :  { %1055 = vadd.xlane.f32.xlu0 %v1054_v46 }
 0xf95   :  { %1137 = vrot.lane.b32.xlu1 %v1014_v36, %s1902_s1 }
 0xf96   :  { %v1096_v54 = vpop.permute.xlu0 %1095 }
 0xf97   :  { %v1098_v20 = vsel %vm1019_vm9, %v1096_v54, 0.0 }
 0xf98   :  { %1075 = vadd.xlane.f32.xlu0 %v1074_v47 }
 0xf9a   :  { %v1090_v56 = vpop.permute.xlu0 %1089 }
 0xf9b   :  { %v1092_v4 = vsel %vm1010_vm10, %v1090_v56, 0.0 }
 0xf9c   :  { %1115 = vadd.xlane.f32.xlu0 %v1114_v49 }
 0xf9e   :  { %v1128_v61 = vpop.permute.xlu0 %1127 }
 0xf9f   :  { %v1130_v0 = vsel %vm1032_vm8, %v1128_v61, 0.0 }
 0xfa2   :  { %v1144_v9 = vpop.permute.xlu0 %1143 }
 0xfa3   :  { %v1146_v12 = vsel %vm1010_vm10, %v1144_v9, 0.0 }
 0xfb9   :  { %1012 = vadd.xlane.f32.xlu1 %v1011_v52 }
 0xfbd   :  { %1083 = vadd.xlane.f32.xlu1 %v1082_v25 }
 0xfc1   :  { %1099 = vadd.xlane.f32.xlu1 %v1098_v20 }
 0xffb   :  { %v1017_v60 = vpop.permute.xlu1 %1016 }
 0xffc   :  { %v1020_v22 = vsel %vm1019_vm9, %v1017_v60, 0.0 }
 0xffd   :  { %1021 = vadd.xlane.f32.xlu1 %v1020_v22 }
 0xfff   :  { %v1106_v63 = vpop.permute.xlu1 %1105 }
0x1000   :  { %v1108_v2 = vsel %vm1032_vm8, %v1106_v63, 0.0 }
0x1001   :  { %1109 = vadd.xlane.f32.xlu0 %v1108_v2  ;;  %1093 = vadd.xlane.f32.xlu1 %v1092_v4 }
0x1003   :  { %v1122_v5 = vpop.permute.xlu1 %1121 }
0x1004   :  { %v1124_v6 = vsel %vm1041_vm7, %v1122_v5, 0.0 }
0x1005   :  { %1125 = vadd.xlane.f32.xlu0 %v1124_v6  ;;  %1131 = vadd.xlane.f32.xlu1 %v1130_v0 }
0x1007   :  { %v1138_v10 = vpop.permute.xlu1 %1137 }
0x1008   :  { %v1140_v11 = vsel %vm1019_vm9, %v1138_v10, 0.0 }
0x1009   :  { %1141 = vadd.xlane.f32.xlu0 %v1140_v11  ;;  %1147 = vadd.xlane.f32.xlu1 %v1146_v12 }
0x1015   :  { %v1044_v14 = vpop.xlane.xlu0 %1043 }
0x1016   :  { %v1046_v26 = vrot.slane %v1044_v14, 2 }
0x1019   :  { %v1035_v16 = vpop.xlane.xlu0 %1034 }
0x101a   :  { %v1048_v35 = vadd.f32 %v1046_v26, %v1035_v16 }
0x101c   :  { %v1154_v53 = vrot.slane %v1048_v35, 2 }
0x101d   :  { %v1064_v17 = vpop.xlane.xlu0 %1063 }
0x101e   :  { %v1066_v7 = vrot.slane %v1064_v17, 6 }
0x101f   :  { %1242 = vrot.lane.b32.xlu0 %v1241_v13, %s1903_s0 }
0x1021   :  { %v1056_v19 = vpop.xlane.xlu0 %1055 }
0x1022   :  { %v1068_v44 = vadd.f32 %v1066_v7, %v1056_v19 }
0x1024   :  { %v1158_v36 = vrot.slane %v1068_v44, 4 }
0x1025   :  { %v1076_v29 = vpop.xlane.xlu0 %1075 }
0x1029   :  { %v1116_v28 = vpop.xlane.xlu0 %1115 }
0x102a   :  { %v1118_v38 = vrot.slane %v1116_v28, 2 }
0x1046   :  { %v1013_v18 = vpop.xlane.xlu1 %1012 }
0x104a   :  { %v1084_v21 = vpop.xlane.xlu1 %1083 }
0x104b   :  { %v1086_v40 = vrot.slane %v1084_v21, 2 }
0x104d   :  { %v1088_v55 = vadd.f32 %v1086_v40, %v1076_v29 }
0x104e   :  { %v1100_v23 = vpop.xlane.xlu1 %1099 }
0x104f   :  { %v1162_v42 = vrot.slane %v1088_v55, 6  ;;  %v1102_v43 = vrot.slane %v1100_v23, 6 }
0x108a   :  { %v1022_v8 = vpop.xlane.xlu1 %1021 }
0x108b   :  { %v1024_v30 = vrot.slane %v1022_v8, 6 }
0x108d   :  { %v1026_v31 = vadd.f32 %v1024_v30, %v1013_v18 }
0x108e   :  { %v1094_v32 = vpop.xlane.xlu1 %1093  ;;  %v1110_v34 = vpop.xlane.xlu0 %1109 }
0x108f   :  { %v1156_v39 = vmax.f32 %v1026_v31, %v1154_v53  ;;  %v1120_v46 = vadd.f32 %v1118_v38, %v1110_v34  ;;  %v1104_v49 = vadd.f32 %v1102_v43, %v1094_v32  ;;  %v1255_v53 = vrot.slane %v2123_v62, 2 }
0x1090   :  { %v1290_v38 = vrot.slane %v2093_v15, 2 }
0x1091   :  { %v1160_v45 = vmax.f32 %v1156_v39, %v1158_v36  ;;  %v1167_v25 = vrot.slane %v1120_v46, 2 }
0x1092   :  { %v1132_v47 = vpop.xlane.xlu1 %1131  ;;  %v1126_v48 = vpop.xlane.xlu0 %1125 }
0x1093   :  { %v1164_v50 = vmax.f32 %v1160_v45, %v1162_v42  ;;  %v1134_v51 = vrot.slane %v1132_v47, 6  ;;  %v1320_v47 = vrot.slane %v2053_v33, 2 }
0x1095   :  { %v1165_v52 = vmax.f32 %v1164_v50, %v1104_v49  ;;  %v1136_v54 = vadd.f32 %v1134_v51, %v1126_v48  ;;  %v1355_v51 = vrot.slane %v2001_v41, 2 }
0x1096   :  { %v1148_v20 = vpop.xlane.xlu1 %1147  ;;  %v1142_v61 = vpop.xlane.xlu0 %1141 }
0x1097   :  { %v1169_v56 = vmax.f32 %v1165_v52, %v1167_v25  ;;  %v1171_v60 = vrot.slane %v1136_v54, 4  ;;  %v1150_v22 = vrot.slane %v1148_v20, 2  ;;  %v1904_v20 = vmov 0.0|0.0  }
0x1098   :  { %1751 = vmatprep.subr.bf16.mxu1 %v1904_v20  ;;  %1757 = vmatprep.subr.bf16.mxu0 %v1904_v20 }
0x1099   :  { %v1152_v63 = vadd.f32 %v1150_v22, %v1142_v61  ;;  %v1173_v2 = vmax.f32 %v1169_v56, %v1171_v60  ;;  %v186_v22 = vld [vmem:[#allocation2 + $0x1f0] sm:$0xff]  ;;  %v187_v61 = vld [vmem:[#allocation2 + $0x200] sm:$0xff] }
0x109b   :  { %v1175_v4 = vrot.slane %v1152_v63, 6 }
0x109d   :  { %v1177_v5 = vmax.f32 %v1173_v2, %v1175_v4  ;;  %v181_v2 = vld [vmem:[#allocation2 + $0x1a0] sm:$0xff]  ;;  %v182_v4 = vld [vmem:[#allocation2 + $0x1b0] sm:$0xff] }
0x109f   :  { %v1178_v6 = vsub.f32 %v1026_v31, %v1177_v5  ;;  %v1182_v0 = vrot.slane %v1177_v5, 6  ;;  %v1187_v9 = vrot.slane %v1177_v5, 4  ;;  %v1192_v10 = vrot.slane %v1177_v5, 2 }
0x10a0   :  { %v1197_v11 = vsub.f32 %v1104_v49, %v1177_v5 }
0x10a1   :  { %v1179_v12 = vmul.f32 1.442695, %v1178_v6  ;;  %v1184_v13 = vsub.f32 %v1048_v35, %v1182_v0  ;;  %v1189_v14 = vsub.f32 %v1068_v44, %v1187_v9  ;;  %v1194_v19 = vsub.f32 %v1088_v55, %v1192_v10  ;;  %v183_v6 = vld [vmem:[#allocation2 + $0x1c0] sm:$0xff] }
0x10a2   :  { %v1198_v16 = vmul.f32 1.442695, %v1197_v11  ;;  %v1200_v29 = vsub.f32 %v1120_v46, %v1182_v0  ;;  %v1203_v26 = vsub.f32 %v1136_v54, %v1187_v9  ;;  %v1206_v28 = vsub.f32 %v1152_v63, %v1192_v10  ;;  %v185_v54 = vld [vmem:[#allocation2 + $0x1e0] sm:$0xff]  ;;  %v180_v63 = vld [vmem:[#allocation2 + $0x190] sm:$0xff]  ;;  %v1243_v9 = vpop.permute.xlu0 %1242 }
0x10a3   :  { %1829 = vpow2.f32 %v1179_v12  ;;  %v1185_v17 = vmul.f32 1.442695, %v1184_v13  ;;  %v1190_v18 = vmul.f32 1.442695, %v1189_v14  ;;  %v1195_v21 = vmul.f32 1.442695, %v1194_v19 }
0x10a4   :  { %1831 = vpow2.f32 %v1198_v16  ;;  %v1201_v23 = vmul.f32 1.442695, %v1200_v29  ;;  %v1204_v35 = vmul.f32 1.442695, %v1203_v26  ;;  %v1207_v30 = vmul.f32 1.442695, %v1206_v28 }
0x10a5   :  { %1833 = vpow2.f32 %v1185_v17  ;;  %v1758_v5 = vpack.c.bf16 %v181_v2, %v180_v63  ;;  %v1761_v0 = vpack.c.bf16 %v183_v6, %v182_v4 }
0x10a6   :  { %1835 = vpow2.f32 %v1190_v18 }
0x10a7   :  { %1837 = vpow2.f32 %v1195_v21  ;;  %1759 = vmatpush3.bf16.msra.mxu0 %v1758_v5 }
0x10a8   :  { %1839 = vpow2.f32 %v1201_v23  ;;  %1760 = vmatprep.subr.bf16.mxu0 %v1904_v20 }
0x10a9   :  { %1841 = vpow2.f32 %v1204_v35 }
0x10aa   :  { %1843 = vpow2.f32 %v1207_v30 }
0x10ab   :  { %1762 = vmatpush3.bf16.msra.mxu0 %v1761_v0 }
0x10ad   :  { %v1830_v7 = vpop.eup %1829 }
0x10ae   :  { %v1832_v40 = vpop.eup %1831  ;;  %1236 = vperm.xlu1 %1780, %v1830_v7  }
0x10af   :  { %1301 = vperm.xlu0 %1778, %v1832_v40   ;;  %v1834_v8 = vpop.eup %1833 }
0x10b0   :  { %v1836_v44 = vpop.eup %1835  ;;  %v1210_v55 = vrot.slane %v1834_v8, 2 }
0x10b1   :  { %v1838_v31 = vpop.eup %1837  ;;  %v1214_v36 = vrot.slane %v1836_v44, 4 }
0x10b2   :  { %1247 = vperm.xlu1 %1780, %v1834_v8   ;;  %v1212_v32 = vadd.f32 %v1830_v7, %v1210_v55  ;;  %v1840_v34 = vpop.eup %1839  ;;  %v1218_v43 = vrot.slane %v1838_v31, 6 }
0x10b3   :  { %1265 = vperm.xlu0 %1778, %v1836_v44   ;;  %v1842_v42 = vpop.eup %1841 }
0x10b4   :  { %v1216_v39 = vadd.f32 %v1214_v36, %v1212_v32  ;;  %v1844_v46 = vpop.eup %1843  ;;  %v1227_v50 = vrot.slane %v1842_v42, 4 }
0x10b5   :  { %v1231_v25 = vrot.slane %v1844_v46, 6 }
0x10b6   :  { %1256 = vrot.lane.b32.xlu1 %v1255_v53, %s1903_s0  ;;  %v1220_v45 = vadd.f32 %v1218_v43, %v1216_v39 }
0x10b7   :  { %1282 = vperm.xlu0 %1778, %v1838_v31  }
0x10b8   :  { %v1221_v48 = vadd.f32 %v1832_v40, %v1220_v45 }
0x10ba   :  { %1273 = vrot.lane.b32.xlu1 %v893_v57, %s1903_s0  ;;  %v1223_v57 = vrot.slane %v1840_v34, 2 }
0x10bb   :  { %1312 = vperm.xlu0 %1778, %v1840_v34  }
0x10bc   :  { %v1225_v49 = vadd.f32 %v1223_v57, %v1221_v48 }
0x10be   :  { %1291 = vrot.lane.b32.xlu1 %v1290_v38, %s1903_s0  ;;  %v1229_v52 = vadd.f32 %v1227_v50, %v1225_v49 }
0x10bf   :  { %1330 = vperm.xlu0 %1778, %v1842_v42  }
0x10c0   :  { %v1233_v60 = vadd.f32 %v1231_v25, %v1229_v52 }
0x10c2   :  { %1306 = vrot.lane.b32.xlu1 %v2075_v59, %s1903_s0  ;;  %v184_v59 = vld [vmem:[#allocation2 + $0x1d0] sm:$0xff] }
0x10c3   :  { %1347 = vperm.xlu0 %1778, %v1844_v46   ;;  %v1752_v56 = vpack.c.bf16 %v185_v54, %v184_v59 }
0x10c5   :  { %1753 = vmatpush3.bf16.msra.mxu1 %v1752_v56 }
0x10c6   :  { %1321 = vrot.lane.b32.xlu1 %v1320_v47, %s1903_s0  ;;  %1754 = vmatprep.subr.bf16.mxu1 %v1904_v20 }
0x10ca   :  { %1338 = vrot.lane.b32.xlu1 %v485_v27, %s1903_s0  ;;  %v1755_v27 = vpack.c.bf16 %v187_v61, %v186_v22 }
0x10cc   :  { %1756 = vmatpush3.bf16.msra.mxu1 %v1755_v27 }
0x10ce   :  { %1356 = vrot.lane.b32.xlu1 %v1355_v51, %s1903_s0 }
0x10d2   :  { %1515 = vperm.xlu1 %1780, %v1233_v60  }
0x112d   :  { %v1237_v10 = vpop.permute.xlu1 %1236 }
0x112e   :  { %v1302_v11 = vpop.permute.xlu0 %1301  ;;  %v1239_v24 = vmul.f32 %v1237_v10, %v2001_v41  ;;  %v1245_v38 = vmul.f32 %v1243_v9, %v1237_v10 }
0x112f   :  { %v1304_v44 = vmul.f32 %v1302_v11, %v2093_v15 }
0x1131   :  { %v1248_v12 = vpop.permute.xlu1 %1247 }
0x1132   :  { %v1250_v13 = vmul.f32 %v1248_v12, %v2024_v3  ;;  %v1266_v14 = vpop.permute.xlu0 %1265 }
0x1133   :  { %v1268_v16 = vmul.f32 %v1266_v14, %v2053_v33 }
0x1134   :  { %v1252_v17 = vrot.slane %v1250_v13, 2 }
0x1135   :  { %v1257_v18 = vpop.permute.xlu1 %1256  ;;  %v1270_v21 = vrot.slane %v1268_v16, 4 }
0x1136   :  { %v1254_v19 = vadd.f32 %v1252_v17, %v1239_v24  ;;  %v1283_v29 = vpop.permute.xlu0 %1282  ;;  %v1259_v3 = vmul.f32 %v1257_v18, %v1248_v12 }
0x1137   :  { %v1285_v23 = vmul.f32 %v1283_v29, %v2072_v58 }
0x1138   :  { %v1272_v26 = vadd.f32 %v1270_v21, %v1254_v19  ;;  %v1261_v32 = vrot.slane %v1259_v3, 2 }
0x1139   :  { %v1287_v7 = vrot.slane %v1285_v23, 6  ;;  %v1274_v40 = vpop.permute.xlu1 %1273 }
0x113a   :  { %v1313_v35 = vpop.permute.xlu0 %1312  ;;  %v1276_v30 = vmul.f32 %v1274_v40, %v1266_v14  ;;  %v1263_v45 = vadd.f32 %v1261_v32, %v1245_v38 }
0x113b   :  { %v1289_v28 = vadd.f32 %v1287_v7, %v1272_v26  ;;  %v1315_v8 = vmul.f32 %v1313_v35, %v2111_v37 }
0x113c   :  { %v1278_v39 = vrot.slane %v1276_v30, 4 }
0x113d   :  { %v1292_v33 = vpop.permute.xlu1 %1291  ;;  %v1305_v53 = vadd.f32 %v1304_v44, %v1289_v28  ;;  %v1317_v55 = vrot.slane %v1315_v8, 2 }
0x113e   :  { %v1331_v41 = vpop.permute.xlu0 %1330  ;;  %v1294_v34 = vmul.f32 %v1292_v33, %v1283_v29  ;;  %v1280_v57 = vadd.f32 %v1278_v39, %v1263_v45 }
0x113f   :  { %v1333_v31 = vmul.f32 %v1331_v41, %v2123_v62  ;;  %v1319_v43 = vadd.f32 %v1317_v55, %v1305_v53 }
0x1140   :  { %v1296_v46 = vrot.slane %v1294_v34, 6 }
0x1141   :  { %v1335_v58 = vrot.slane %v1333_v31, 4  ;;  %v1307_v36 = vpop.permute.xlu1 %1306 }
0x1142   :  { %v1348_v42 = vpop.permute.xlu0 %1347  ;;  %v1298_v51 = vadd.f32 %v1296_v46, %v1280_v57  ;;  %v1309_v62 = vmul.f32 %v1307_v36, %v1302_v11  ;;  %v179_v11 = vld [vmem:[#allocation2 + $0x182] ss:$0 sm:$0xff] }
0x1143   :  { %v1350_v37 = vmul.f32 %v1348_v42, %v2153_v1  ;;  %v1337_v15 = vadd.f32 %v1335_v58, %v1319_v43 }
0x1144   :  { %v1310_v54 = vadd.f32 %v1309_v62, %v1298_v51 }
0x1145   :  { %v1352_v47 = vrot.slane %v1350_v37, 6  ;;  %v1322_v48 = vpop.permute.xlu1 %1321 }
0x1146   :  { %v1324_v49 = vmul.f32 %v1322_v48, %v1313_v35 }
0x1147   :  { %v1354_v50 = vadd.f32 %v1352_v47, %v1337_v15 }
0x1148   :  { %v1326_v25 = vrot.slane %v1324_v49, 2 }
0x1149   :  { %1439 = vrot.lane.b32.xlu0 %v1354_v50, %s1902_s1  ;;  %v1339_v52 = vpop.permute.xlu1 %1338 }
0x114a   :  { %v1341_v59 = vmul.f32 %v1339_v52, %v1331_v41  ;;  %v1328_v60 = vadd.f32 %v1326_v25, %v1310_v54 }
0x114c   :  { %v1343_v20 = vrot.slane %v1341_v59, 4 }
0x114d   :  { %v1357_v56 = vpop.permute.xlu1 %1356 }
0x114e   :  { %v1359_v1 = vmul.f32 %v1357_v56, %v1348_v42  ;;  %v1345_v22 = vadd.f32 %v1343_v20, %v1328_v60 }
0x1150   :  { %v1361_v61 = vrot.slane %v1359_v1, 6 }
0x1151   :  { %v1516_v5 = vpop.permute.xlu1 %1515 }
0x1152   :  { %v1363_v27 = vadd.f32 %v1361_v61, %v1345_v22  ;;  %1845 = vrcp.f32 %v1516_v5 }
0x1154   :  { %1578 = vmatmul.mubr.msk.f32.vlgmr.msra.gmra.mrb[10].mxu1 %vm1364_vm12, %v1363_v27 }
0x115c   :  { %v1846_v10 = vpop.eup %1845 }
0x11bb   :  { %v1440_v63 = vpop.permute.xlu0 %1439 }
0x11bc   :  { %1589 = vmatmul.mubr.msk.f32.vlgmr.msra.gmra.mrb[10].mxu0 %vm1364_vm12, %v1440_v63 }
0x1227   :  { %v1434_v2 = vpop.f32.mrb[10].mxu1 }
0x1228   :  { %v1579_v4 = vpop.f32.mrb[11].mxu1 }
0x128f   :  { %v1509_v6 = vpop.f32.mrb[10].mxu0 }
0x1290   :  { %v1510_v0 = vadd.f32 %v1509_v6, %v1434_v2  ;;  %v1590_v9 = vpop.f32.mrb[11].mxu0 }
0x1292   :  { %v1519_v12 = vmul.f32 %v1846_v10, %v1510_v0 }
0x1294   :  { %v1520_v13 = vadd.f32 %v1519_v12, %v179_v11 }
0x1296   :  { %1522 = vst.msk [vmem:[#allocation5] sm:$0x3] %vm1521_vm13, %v1520_v13 }
0x1297   :  { %1880 = shalt.err (!%p1877_p12)
}
0x1298   :  { %s1881_s4 = scalar_lea.hbm %s2219_s2, 32 }
0x1299   :  { %p1882_p13 = scmp.ne.s32.totalorder %s2219_s2, %s1881_s4  ;;  %p1885_p0 = scmp.lt.u32.totalorder %s1881_s4, %s2219_s2 }
0x129b   :  { %p1887_p1 = pnand %p1885_p0, %p1882_p13 }
0x129d   :  { %1890 = shalt.err (!%p1887_p1)
}
0x129e   :  { %1532 = dma.vmem_to_hbm [thread:$0]  %s1530_s28, 32, %s2219_s2, [#allocation4]  }
0x129f   :  { %1893 = dma.done.wait [#allocation4], 32  }
0x12a0   :  { %1894 = vsyncadd [#allocation4], 4294967264 }
0x12a1   :  { %1536 = vsyncpa [#allocation3], 1 }
0x12a2   :  { %1537 = vsyncpa [#allocation4], 1 }

</bundles_post_ra>
